<compile_context>
chip_gen: v6e
topology: v6e:2x2x1
jax: 0.10.0
libtpu: 0.0.40
codegen_flags: <defaults>
</compile_context>

<pallas_src>
import functools

import jax
import jax.numpy as jnp
import numpy as np
from jax.experimental import pallas as pl
from jax.experimental.pallas import tpu as pltpu


def _pegasus_x_gl_attn_kernel(tok_ref, mask_flat_ref, mask_blk_ref,
                              gq_ref, gk_ref, gv_ref, wqkv_ref, wo_ref,
                              local_out_ref, global_out_ref,
                              m_sc, l_sc, acc_sc,
                              *, num_heads, head_dim, blocks_per_step,
                              block_size, mxu_dtype, approx_recip):
    f32 = jnp.float32
    H, D, BP, Kb = num_heads, head_dim, blocks_per_step, block_size
    T = BP * Kb
    E = H * D
    C = H * BP
    G = gq_ref.shape[1]
    n = pl.program_id(1)

    # Per-batch global q/k/v arrive pre-projected & head-shaped from the wrapper.
    gq = gq_ref[...]                                                       # [H, G, D]
    gk = gk_ref[...]
    gv = gv_ref[...]

    # ---- per-batch init (first token tile): seed the flash accumulators with
    #      the (unmasked) global->global scores. ----
    @pl.when(n == 0)
    def _init():
        w_gg = jnp.einsum('hgd,hxd->hgx', gq, gk, preferred_element_type=f32)  # [H, G, G]
        m0 = w_gg.max(-1, keepdims=True)
        e0 = jnp.exp(w_gg - m0)
        m_sc[...] = m0
        l_sc[...] = e0.sum(-1, keepdims=True)
        acc_sc[...] = jnp.einsum('hgx,hxd->hgd', e0.astype(mxu_dtype), gv,
                                 preferred_element_type=f32)

    # ---- fused q/k/v projection of the current token tile (one wide matmul) ----
    tok = tok_ref[...]                                                     # [T, E]
    proj = jnp.dot(tok, wqkv_ref[...], preferred_element_type=f32)         # [T, 3E]

    def split_heads(x2d):                                                  # [T, E] -> [H, T, D]
        return jnp.transpose(x2d.astype(mxu_dtype).reshape(T, H, D), (1, 0, 2))

    lq = split_heads(proj[:, :E])          # scaling already folded into Wq
    lk = split_heads(proj[:, E:2 * E])
    lv = split_heads(proj[:, 2 * E:])

    mask_flat = mask_flat_ref[...]                                         # [1, T]  f32
    mask_blk = mask_blk_ref[...]                                           # [BP, Kb] f32

    # ---- local attention: each block's queries attend to [global ; own block].
    #      local->global is block-independent -> flat [H, T, G] layout;
    #      local->local is block-diagonal -> blocked [H*BP, Kb, Kb] layout kept
    #      end-to-end (no reshape of the big score/exp tensors). ----
    w_lg = jnp.einsum('htd,hgd->htg', lq, gk, preferred_element_type=f32)  # [H, T, G]
    lq_b = lq.reshape(C, Kb, D)
    lk_b = lk.reshape(C, Kb, D)
    lv_b = lv.reshape(C, Kb, D)
    w_ll = jnp.einsum('ckd,cxd->ckx', lq_b, lk_b, preferred_element_type=f32)  # [C, Kb, Kb]
    # Leading-dim-only split/merge (last two dims untouched) -> layout-free.
    w_ll = (w_ll.reshape(H, BP, Kb, Kb)
            + mask_blk[None, :, None, :]).reshape(C, Kb, Kb)

    # Combined row max over [global keys ; own-block keys]; only the tiny
    # [., ., 1] stats cross between the flat and blocked layouts.
    m_blk = jnp.maximum(w_lg.max(-1, keepdims=True).reshape(C, Kb, 1),
                        w_ll.max(-1, keepdims=True))                       # [C, Kb, 1]
    e_ll = jnp.exp(w_ll - m_blk)                                           # [C, Kb, Kb]
    m_flat = m_blk.reshape(H, T, 1)
    e_lg = jnp.exp(w_lg - m_flat)                                          # [H, T, G]
    den = e_lg.sum(-1, keepdims=True) + e_ll.sum(-1, keepdims=True).reshape(H, T, 1)
    inv_den = pl.reciprocal(den, approx=approx_recip)                      # EUP, off VALU

    ctx = jnp.einsum('htg,hgd->htd', e_lg.astype(mxu_dtype), gv,
                     preferred_element_type=f32)                           # [H, T, D]
    ctx_ll = jnp.einsum('ckx,cxd->ckd', e_ll.astype(mxu_dtype), lv_b,
                        preferred_element_type=f32)                        # [C, Kb, D]
    ctx = (ctx + ctx_ll.reshape(H, T, D)) * inv_den
    local_ctx = jnp.transpose(ctx.astype(mxu_dtype), (1, 0, 2)).reshape(T, E)
    local_out_ref[...] = jnp.dot(local_ctx, wo_ref[...],
                                 preferred_element_type=f32).astype(local_out_ref.dtype)

    # ---- global attention: flash update with this tile's local keys/values ----
    w_gl = jnp.einsum('hgd,htd->hgt', gq, lk, preferred_element_type=f32) + mask_flat
    m_prev = m_sc[...]
    m_new = jnp.maximum(m_prev, w_gl.max(-1, keepdims=True))
    alpha = jnp.exp(m_prev - m_new)
    p = jnp.exp(w_gl - m_new)
    l_sc[...] = alpha * l_sc[...] + p.sum(-1, keepdims=True)
    acc_sc[...] = alpha * acc_sc[...] + jnp.einsum('hgt,htd->hgd',
                                                   p.astype(mxu_dtype), lv,
                                                   preferred_element_type=f32)
    m_sc[...] = m_new

    # ---- finalize the resident global output on the last tile ----
    @pl.when(n == pl.num_programs(1) - 1)
    def _finalize():
        g_ctx = acc_sc[...] * pl.reciprocal(l_sc[...], approx=approx_recip)
        g_ctx = jnp.transpose(g_ctx.astype(mxu_dtype), (1, 0, 2)).reshape(G, E)
        global_out_ref[...] = jnp.dot(g_ctx, wo_ref[...],
                                      preferred_element_type=f32).astype(global_out_ref.dtype)


def _invariant_spec(block_shape, index_map):
    """BlockSpec for operands whose block never changes along the tile axis:
    single-buffer them so they don't cost 2x VMEM."""
    try:
        return pl.BlockSpec(block_shape, index_map, pipeline_mode=pl.Buffered(1))
    except Exception:  # older pallas without pipeline_mode
        return pl.BlockSpec(block_shape, index_map)


def _step_vmem_bytes(T, E, G, H, D, Kb, mxu_itemsize, out_itemsize):
    """Rough per-grid-step VMEM footprint used to bound blocks_per_step."""
    f, m = 4, mxu_itemsize
    est = 0
    est += 2 * T * E * m                         # token tile in (double-buffered)
    est += 2 * T * E * out_itemsize              # local out tile (double-buffered)
    est += 4 * E * E * m                         # fused QKV + Wo weights (single-buffered)
    est += 3 * G * E * m + 2 * G * E * out_itemsize   # global q/k/v + global out
    est += G * E * f + 2 * H * G * f             # flash accumulator scratch
    est += 3 * T * E * f                         # fused projection (f32)
    est += 3 * T * E * m                         # lq/lk/lv
    est += 2 * H * T * G * f                     # w_lg + e_lg
    est += 2 * H * T * Kb * f                    # w_ll + e_ll (blocked)
    est += 2 * T * E * f                         # ctx + ctx_ll
    est += 2 * H * G * T * f                     # w_gl + p (global flash scores)
    return int(est * 1.25)                       # headroom for casts / relayouts


def pegasus_x_global_local_attention(token_hidden, global_hidden, attention_mask,
                                     wq, wk, wv, wo, *, num_heads, block_size,
                                     blocks_per_step=None, mxu_dtype=None,
                                     vmem_limit_bytes=None):
    """Fused Pegasus-X global/local attention.

    attention_mask is additive (0 keep / -1e9 masked), matching the module's
    `attn_weights + mask` contract.  Returns (local_out [B,S,E], global_out [B,G,E]).
    """
    B, S, E = token_hidden.shape
    G = global_hidden.shape[1]
    if E % num_heads != 0:
        raise ValueError("embed_dim must be divisible by num_heads")
    if S % block_size != 0:
        raise ValueError("seq_len must be a multiple of block_size (pre-padded)")
    head_dim = E // num_heads
    num_blocks = S // block_size
    scaling = head_dim ** -0.5
    out_dtype = token_hidden.dtype
    if mxu_dtype is None:
        # bf16 MXU operands by default (2x MXU throughput, half the VMEM);
        # softmax math / accumulators stay f32 in the kernel.
        mxu_dtype = jnp.bfloat16 if token_hidden.dtype == jnp.float32 else token_hidden.dtype
    itemsize = jnp.dtype(mxu_dtype).itemsize
    out_itemsize = jnp.dtype(out_dtype).itemsize
    approx_recip = jnp.dtype(mxu_dtype) != jnp.dtype(jnp.float32)

    # Generation-aware VMEM budget (v7x has 64 MiB/TC, v5e/v6e have 128 MiB).
    try:
        phys_vmem = int(pltpu.get_tpu_info().vmem_capacity_bytes)
    except Exception:
        phys_vmem = 128 * 1024 * 1024
    if vmem_limit_bytes is None:
        vmem_limit_bytes = min(phys_vmem // 2, 64 * 1024 * 1024)

    # Group several local blocks per grid step: aim for ~512 lane/sublane-dense
    # query rows per step, bounded by the per-generation VMEM budget.
    if blocks_per_step is None:
        target_rows = 512
        budget = int(0.8 * vmem_limit_bytes)
        blocks_per_step = 1
        for c in range(1, num_blocks + 1):
            if num_blocks % c:
                continue
            t = c * block_size
            if c > 1 and (t > max(target_rows, block_size)
                          or _step_vmem_bytes(t, E, G, num_heads, head_dim,
                                              block_size, itemsize, out_itemsize) > budget):
                break
            blocks_per_step = c
    if num_blocks % blocks_per_step != 0:
        raise ValueError("blocks_per_step must divide num_blocks")
    n_steps = num_blocks // blocks_per_step
    T = blocks_per_step * block_size

    # Fold 1/sqrt(d) into Wq, fuse Wq/Wk/Wv into one [E, 3E] slab (one wide
    # projection matmul per tile), pre-transpose to [in, out], downcast for MXU.
    wqkv_t = jnp.concatenate([wq.T * scaling, wk.T, wv.T], axis=1).astype(mxu_dtype)  # [E, 3E]
    wo_t = wo.T.astype(mxu_dtype)                                                     # [E, E]
    tok = token_hidden.astype(mxu_dtype)

    # Hoist the (small, O(B*G*E^2)) global-token projections to plain XLA and
    # pass head-shaped q/k/v per batch row — removes the kernel cold path and
    # three resident scratch buffers.
    gproj = jnp.dot(global_hidden.astype(mxu_dtype), wqkv_t,
                    preferred_element_type=jnp.float32)                               # [B, G, 3E]

    def heads(x):  # [B, G, E] -> [B, H, G, D]
        return x.reshape(B, G, num_heads, head_dim).transpose(0, 2, 1, 3).astype(mxu_dtype)

    gq_h, gk_h, gv_h = heads(gproj[..., :E]), heads(gproj[..., E:2 * E]), heads(gproj[..., 2 * E:])

    mask_f32 = attention_mask.astype(jnp.float32)
    mask_flat = mask_f32.reshape(B, n_steps, 1, T)                        # per-tile, flat
    mask_blk = mask_f32.reshape(B, n_steps, blocks_per_step, block_size)  # per-tile, blocked

    kernel = functools.partial(
        _pegasus_x_gl_attn_kernel,
        num_heads=num_heads, head_dim=head_dim,
        blocks_per_step=blocks_per_step, block_size=block_size,
        mxu_dtype=mxu_dtype, approx_recip=approx_recip)

    flops = int(2 * B * S * E * 3 * E + 2 * B * (S + G) * E * E            # qkv + out proj
                + 4 * B * num_heads * S * (G + block_size) * head_dim      # local attn
                + 4 * B * num_heads * G * (G + S) * head_dim)              # global attn
    transcendentals = int(B * num_heads * (S * (G + block_size) + G * (G + S)))
    bytes_accessed = int((B * S * E + 3 * B * G * E + 4 * E * E) * itemsize
                         + (B * S * E + B * G * E) * out_itemsize
                         + 2 * B * S * 4)
    cost = pl.CostEstimate(flops=flops, transcendentals=transcendentals,
                           bytes_accessed=bytes_accessed)

    local_out, global_out = pl.pallas_call(
        kernel,
        out_shape=(jax.ShapeDtypeStruct((B, S, E), out_dtype),
                   jax.ShapeDtypeStruct((B, G, E), out_dtype)),
        grid_spec=pltpu.PrefetchScalarGridSpec(
            num_scalar_prefetch=0,
            grid=(B, n_steps),
            in_specs=[
                pl.BlockSpec((None, T, E), lambda b, n: (b, n, 0)),            # token tile
                pl.BlockSpec((None, None, 1, T), lambda b, n: (b, n, 0, 0)),   # mask (flat)
                pl.BlockSpec((None, None, blocks_per_step, block_size),
                             lambda b, n: (b, n, 0, 0)),                       # mask (blocked)
                _invariant_spec((None, num_heads, G, head_dim),
                                lambda b, n: (b, 0, 0, 0)),                    # global q
                _invariant_spec((None, num_heads, G, head_dim),
                                lambda b, n: (b, 0, 0, 0)),                    # global k
                _invariant_spec((None, num_heads, G, head_dim),
                                lambda b, n: (b, 0, 0, 0)),                    # global v
                _invariant_spec((E, 3 * E), lambda b, n: (0, 0)),              # fused Wqkv^T
                _invariant_spec((E, E), lambda b, n: (0, 0)),                  # Wo^T
            ],
            out_specs=(
                pl.BlockSpec((None, T, E), lambda b, n: (b, n, 0)),
                pl.BlockSpec((None, G, E), lambda b, n: (b, 0, 0)),
            ),
            scratch_shapes=[
                pltpu.VMEM((num_heads, G, 1), jnp.float32),          # running max
                pltpu.VMEM((num_heads, G, 1), jnp.float32),          # running sum
                pltpu.VMEM((num_heads, G, head_dim), jnp.float32),   # running acc
            ],
        ),
        compiler_params=pltpu.CompilerParams(
            # batch axis shards across TensorCores; the tile axis carries the
            # resident global-attention accumulator, so it stays arbitrary.
            dimension_semantics=("parallel", "arbitrary"),
            vmem_limit_bytes=int(vmem_limit_bytes)),
        cost_estimate=cost,
    )(tok, mask_flat, mask_blk, gq_h, gk_h, gv_h, wqkv_t, wo_t)
    return local_out, global_out


def _reference(token_hidden, global_hidden, mask, wq, wk, wv, wo,
               num_heads, block_size):
    """Pure-JAX transcription of the PyTorch forward for verification."""
    B, S, E = token_hidden.shape
    G = global_hidden.shape[1]
    D = E // num_heads
    N = S // block_size
    scaling = D ** -0.5

    def shape(x, L):
        return x.reshape(B, L, num_heads, D).transpose(0, 2, 1, 3)   # [B,H,L,D]

    lq = shape(token_hidden @ wq.T * scaling, S)
    lk = shape(token_hidden @ wk.T, S)
    lv = shape(token_hidden @ wv.T, S)
    gq = shape(global_hidden @ wq.T * scaling, G)
    gk = shape(global_hidden @ wk.T, G)
    gv = shape(global_hidden @ wv.T, G)

    # global attention
    kall = jnp.concatenate([gk, lk], axis=2)
    vall = jnp.concatenate([gv, lv], axis=2)
    emask = jnp.pad(mask, ((0, 0), (G, 0)))
    w = jnp.einsum('bhgf,bhxf->bhgx', gq, kall) + emask[:, None, None, :]
    p = jax.nn.softmax(w, axis=-1)
    g_out = jnp.einsum('bhgx,bhxf->bhgf', p, vall)
    g_out = g_out.transpose(0, 2, 1, 3).reshape(B, G, E) @ wo.T

    # local attention
    blq = lq.reshape(B, num_heads, N, block_size, D)
    blk = lk.reshape(B, num_heads, N, block_size, D)
    blv = lv.reshape(B, num_heads, N, block_size, D)
    emask2 = jnp.pad(mask.reshape(B, N, block_size), ((0, 0), (0, 0), (G, 0)))
    l2g = jnp.einsum('bhnkf,bhgf->bhnkg', blq, gk)
    l2l = jnp.einsum('bhnkf,bhnxf->bhnkx', blq, blk)
    w = jnp.concatenate([l2g, l2l], axis=-1) + emask2[:, None, :, None, :]
    p = jax.nn.softmax(w, axis=-1)
    pg, pll = p[..., :G], p[..., G:]
    o = (jnp.einsum('bhnkg,bhgf->bhnkf', pg, gv)
         + jnp.einsum('bhnkx,bhnxf->bhnkf', pll, blv))
    o = o.transpose(0, 2, 3, 1, 4).reshape(B, S, E) @ wo.T
    return o, g_out


if __name__ == "__main__":
    # Small, module-consistent shapes.
    B, S, G, E = 2, 32, 8, 32
    num_heads, block_size = 4, 8          # head_dim = 8, num_blocks = 4

    key = jax.random.PRNGKey(0)
    k1, k2, k3, k4, k5, k6, k7 = jax.random.split(key, 7)

    token_hidden = jax.random.normal(k1, (B, S, E), dtype=jnp.float32)
    global_hidden = jax.random.normal(k2, (B, G, E), dtype=jnp.float32)
    # Additive attention mask: 0 for kept tokens, -1e9 for masked tokens.
    attention_mask = jnp.where(
        jax.random.uniform(k3, (B, S)) > 0.8, -1e9, 0.0).astype(jnp.float32)

    wq = 0.05 * jax.random.normal(k4, (E, E), dtype=jnp.float32)
    wk = 0.05 * jax.random.normal(k5, (E, E), dtype=jnp.float32)
    wv = 0.05 * jax.random.normal(k6, (E, E), dtype=jnp.float32)
    wo = 0.05 * jax.random.normal(k7, (E, E), dtype=jnp.float32)

    ref_local, ref_global = _reference(
        token_hidden, global_hidden, attention_mask, wq, wk, wv, wo,
        num_heads, block_size)

    # f32 MXU path, 2 local blocks per grid step -> exercises the multi-step
    # flash accumulation of the global-attention path.
    local_out, global_out = pegasus_x_global_local_attention(
        token_hidden, global_hidden, attention_mask, wq, wk, wv, wo,
        num_heads=num_heads, block_size=block_size,
        blocks_per_step=2, mxu_dtype=jnp.float32)
    jax.block_until_ready((local_out, global_out))
    np.testing.assert_allclose(np.asarray(local_out), np.asarray(ref_local),
                               rtol=2e-4, atol=2e-4)
    np.testing.assert_allclose(np.asarray(global_out), np.asarray(ref_global),
                               rtol=2e-4, atol=2e-4)

    # Default path: bf16 MXU operands, automatic tile grouping & VMEM budget.
    local16, global16 = pegasus_x_global_local_attention(
        token_hidden, global_hidden, attention_mask, wq, wk, wv, wo,
        num_heads=num_heads, block_size=block_size)
    jax.block_until_ready((local16, global16))
    np.testing.assert_allclose(np.asarray(local16), np.asarray(ref_local),
                               rtol=2e-2, atol=1e-2)
    np.testing.assert_allclose(np.asarray(global16), np.asarray(ref_global),
                               rtol=2e-2, atol=1e-2)

    print("KERNEL_OK")
</pallas_src>

<mosaic_0001>
module attributes {stable_mosaic.version = 11 : i64} {
  func.func @_pegasus_x_gl_attn_kernel(%arg0: i32, %arg1: i32, %arg2: memref<1x16x32xf32, #tpu.memory_space<vmem>>, %arg3: memref<1x1x1x16xf32, #tpu.memory_space<vmem>>, %arg4: memref<1x1x2x8xf32, #tpu.memory_space<vmem>>, %arg5: memref<1x4x8x8xf32, #tpu.memory_space<vmem>>, %arg6: memref<1x4x8x8xf32, #tpu.memory_space<vmem>>, %arg7: memref<1x4x8x8xf32, #tpu.memory_space<vmem>>, %arg8: memref<32x96xf32, #tpu.memory_space<vmem>>, %arg9: memref<32x32xf32, #tpu.memory_space<vmem>>, %arg10: memref<1x16x32xf32, #tpu.memory_space<vmem>>, %arg11: memref<1x8x32xf32, #tpu.memory_space<vmem>>, %arg12: memref<4x8x1xf32, #tpu.memory_space<vmem>>, %arg13: memref<4x8x1xf32, #tpu.memory_space<vmem>>, %arg14: memref<4x8x8xf32, #tpu.memory_space<vmem>>) attributes {dimension_semantics = [#tpu.dimension_semantics<parallel>, #tpu.dimension_semantics<arbitrary>], iteration_bounds = array<i64: 2, 2>, scalar_prefetch = 0 : i64, scratch_operands = 3 : i64, tpu.core_type = #tpu.core_type<tc>, window_params = [{transform_indices = @transform_0, window_bounds = array<i64: 1, 16, 32>}, {transform_indices = @transform_1, window_bounds = array<i64: 1, 1, 1, 16>}, {transform_indices = @transform_2, window_bounds = array<i64: 1, 1, 2, 8>}, {pipeline_mode = #tpu.pipeline_mode<synchronous>, transform_indices = @transform_3, window_bounds = array<i64: 1, 4, 8, 8>}, {pipeline_mode = #tpu.pipeline_mode<synchronous>, transform_indices = @transform_4, window_bounds = array<i64: 1, 4, 8, 8>}, {pipeline_mode = #tpu.pipeline_mode<synchronous>, transform_indices = @transform_5, window_bounds = array<i64: 1, 4, 8, 8>}, {pipeline_mode = #tpu.pipeline_mode<synchronous>, transform_indices = @transform_6, window_bounds = array<i64: 32, 96>}, {pipeline_mode = #tpu.pipeline_mode<synchronous>, transform_indices = @transform_7, window_bounds = array<i64: 32, 32>}, {transform_indices = @transform_8, window_bounds = array<i64: 1, 16, 32>}, {transform_indices = @transform_9, window_bounds = array<i64: 1, 8, 32>}]} {
    %c0 = arith.constant 0 : index
    %c0_0 = arith.constant 0 : index
    %c0_1 = arith.constant 0 : index
    %c0_2 = arith.constant 0 : index
    %0 = vector.load %arg5[%c0, %c0_0, %c0_1, %c0_2] : memref<1x4x8x8xf32, #tpu.memory_space<vmem>>, vector<1x4x8x8xf32>
    %1 = vector.shape_cast %0 : vector<1x4x8x8xf32> to vector<4x8x8xf32>
    %c0_3 = arith.constant 0 : index
    %c0_4 = arith.constant 0 : index
    %c0_5 = arith.constant 0 : index
    %c0_6 = arith.constant 0 : index
    %2 = vector.load %arg6[%c0_3, %c0_4, %c0_5, %c0_6] : memref<1x4x8x8xf32, #tpu.memory_space<vmem>>, vector<1x4x8x8xf32>
    %3 = vector.shape_cast %2 : vector<1x4x8x8xf32> to vector<4x8x8xf32>
    %c0_7 = arith.constant 0 : index
    %c0_8 = arith.constant 0 : index
    %c0_9 = arith.constant 0 : index
    %c0_10 = arith.constant 0 : index
    %4 = vector.load %arg7[%c0_7, %c0_8, %c0_9, %c0_10] : memref<1x4x8x8xf32, #tpu.memory_space<vmem>>, vector<1x4x8x8xf32>
    %5 = vector.shape_cast %4 : vector<1x4x8x8xf32> to vector<4x8x8xf32>
    %c0_i32 = arith.constant 0 : i32
    %6 = arith.cmpi eq, %arg1, %c0_i32 : i32
    %7 = arith.extui %6 : i1 to i32
    %c0_i32_11 = arith.constant 0 : i32
    %8 = arith.cmpi ne, %7, %c0_i32_11 : i32
    scf.if %8 {
      "tpu.trace_start"() <{level = 10 : i32, message = "hgd,hxd->hgx"}> : () -> ()
      %cst_62 = arith.constant dense<0.000000e+00> : vector<4x8x8xf32>
      %98 = tpu.matmul %1, %3, %cst_62 {dimension_numbers = #tpu.dot_dimension_numbers<[2], [2], [1], [1], [0, 0, 0, 1, 1, 1], [0], [0]>} : vector<4x8x8xf32>, vector<4x8x8xf32>, vector<4x8x8xf32> -> vector<4x8x8xf32>
      "tpu.trace_stop"() : () -> ()
      %cst_63 = arith.constant dense<0xFF800000> : vector<4x8xf32>
      %99 = vector.multi_reduction <maximumf>, %98, %cst_63 [2] : vector<4x8x8xf32> to vector<4x8xf32>
      %100 = vector.shape_cast %99 : vector<4x8xf32> to vector<4x8x1xf32>
      %101 = vector.broadcast %100 : vector<4x8x1xf32> to vector<4x8x8xf32>
      %102 = arith.subf %98, %101 : vector<4x8x8xf32>
      %103 = math.exp %102 : vector<4x8x8xf32>
      %c0_64 = arith.constant 0 : index
      %c0_65 = arith.constant 0 : index
      %c0_66 = arith.constant 0 : index
      %104 = vector.load %arg12[%c0_64, %c0_65, %c0_66] : memref<4x8x1xf32, #tpu.memory_space<vmem>>, vector<4x8x1xf32>
      tpu.vector_store %arg12[%c0_64, %c0_65, %c0_66], %100 {strides = array<i32>} : memref<4x8x1xf32, #tpu.memory_space<vmem>>, vector<4x8x1xf32>,
      %cst_67 = arith.constant dense<0.000000e+00> : vector<4x8xf32>
      %105 = vector.multi_reduction <add>, %103, %cst_67 [2] : vector<4x8x8xf32> to vector<4x8xf32>
      %106 = vector.shape_cast %105 : vector<4x8xf32> to vector<4x8x1xf32>
      %c0_68 = arith.constant 0 : index
      %c0_69 = arith.constant 0 : index
      %c0_70 = arith.constant 0 : index
      %107 = vector.load %arg13[%c0_68, %c0_69, %c0_70] : memref<4x8x1xf32, #tpu.memory_space<vmem>>, vector<4x8x1xf32>
      tpu.vector_store %arg13[%c0_68, %c0_69, %c0_70], %106 {strides = array<i32>} : memref<4x8x1xf32, #tpu.memory_space<vmem>>, vector<4x8x1xf32>,
      "tpu.trace_start"() <{level = 10 : i32, message = "hgx,hxd->hgd"}> : () -> ()
      %cst_71 = arith.constant dense<0.000000e+00> : vector<4x8x8xf32>
      %108 = tpu.matmul %103, %5, %cst_71 {dimension_numbers = #tpu.dot_dimension_numbers<[2], [1], [1], [2], [0, 0, 0, 1, 1, 2], [0], [0]>} : vector<4x8x8xf32>, vector<4x8x8xf32>, vector<4x8x8xf32> -> vector<4x8x8xf32>
      "tpu.trace_stop"() : () -> ()
      %c0_72 = arith.constant 0 : index
      %c0_73 = arith.constant 0 : index
      %c0_74 = arith.constant 0 : index
      %109 = vector.load %arg14[%c0_72, %c0_73, %c0_74] : memref<4x8x8xf32, #tpu.memory_space<vmem>>, vector<4x8x8xf32>
      tpu.vector_store %arg14[%c0_72, %c0_73, %c0_74], %108 {strides = array<i32>} : memref<4x8x8xf32, #tpu.memory_space<vmem>>, vector<4x8x8xf32>,
    } else {
    }
    %c0_12 = arith.constant 0 : index
    %c0_13 = arith.constant 0 : index
    %c0_14 = arith.constant 0 : index
    %9 = vector.load %arg2[%c0_12, %c0_13, %c0_14] : memref<1x16x32xf32, #tpu.memory_space<vmem>>, vector<1x16x32xf32>
    %10 = vector.shape_cast %9 : vector<1x16x32xf32> to vector<16x32xf32>
    %c0_15 = arith.constant 0 : index
    %c0_16 = arith.constant 0 : index
    %11 = vector.load %arg8[%c0_15, %c0_16] : memref<32x96xf32, #tpu.memory_space<vmem>>, vector<32x96xf32>
    %cst = arith.constant dense<0.000000e+00> : vector<16x96xf32>
    %12 = tpu.matmul %10, %11, %cst {dimension_numbers = #tpu.dot_dimension_numbers<[1], [0], [0], [1], [0, 0, 1, 1], [], []>} : vector<16x32xf32>, vector<32x96xf32>, vector<16x96xf32> -> vector<16x96xf32>
    %13 = vector.extract_strided_slice %12 {offsets = [0, 0], sizes = [16, 32], strides = [1, 1]} : vector<16x96xf32> to vector<16x32xf32>
    %14 = vector.shape_cast %13 : vector<16x32xf32> to vector<16x4x8xf32>
    %15 = tpu.transpose %14, [1, 0, 2] : vector<16x4x8xf32> -> vector<4x16x8xf32>
    %16 = vector.extract_strided_slice %12 {offsets = [0, 32], sizes = [16, 32], strides = [1, 1]} : vector<16x96xf32> to vector<16x32xf32>
    %17 = vector.shape_cast %16 : vector<16x32xf32> to vector<16x4x8xf32>
    %18 = tpu.transpose %17, [1, 0, 2] : vector<16x4x8xf32> -> vector<4x16x8xf32>
    %19 = vector.extract_strided_slice %12 {offsets = [0, 64], sizes = [16, 32], strides = [1, 1]} : vector<16x96xf32> to vector<16x32xf32>
    %20 = vector.shape_cast %19 : vector<16x32xf32> to vector<16x4x8xf32>
    %21 = tpu.transpose %20, [1, 0, 2] : vector<16x4x8xf32> -> vector<4x16x8xf32>
    %c0_17 = arith.constant 0 : index
    %c0_18 = arith.constant 0 : index
    %c0_19 = arith.constant 0 : index
    %c0_20 = arith.constant 0 : index
    %22 = vector.load %arg3[%c0_17, %c0_18, %c0_19, %c0_20] : memref<1x1x1x16xf32, #tpu.memory_space<vmem>>, vector<1x1x1x16xf32>
    %23 = vector.shape_cast %22 : vector<1x1x1x16xf32> to vector<1x16xf32>
    %c0_21 = arith.constant 0 : index
    %c0_22 = arith.constant 0 : index
    %c0_23 = arith.constant 0 : index
    %c0_24 = arith.constant 0 : index
    %24 = vector.load %arg4[%c0_21, %c0_22, %c0_23, %c0_24] : memref<1x1x2x8xf32, #tpu.memory_space<vmem>>, vector<1x1x2x8xf32>
    %25 = vector.shape_cast %24 : vector<1x1x2x8xf32> to vector<2x8xf32>
    "tpu.trace_start"() <{level = 10 : i32, message = "htd,hgd->htg"}> : () -> ()
    %cst_25 = arith.constant dense<0.000000e+00> : vector<4x16x8xf32>
    %26 = tpu.matmul %15, %3, %cst_25 {dimension_numbers = #tpu.dot_dimension_numbers<[2], [2], [1], [1], [0, 0, 0, 1, 1, 1], [0], [0]>} : vector<4x16x8xf32>, vector<4x8x8xf32>, vector<4x16x8xf32> -> vector<4x16x8xf32>
    "tpu.trace_stop"() : () -> ()
    %27 = vector.shape_cast %15 : vector<4x16x8xf32> to vector<8x8x8xf32>
    %28 = vector.shape_cast %18 : vector<4x16x8xf32> to vector<8x8x8xf32>
    %29 = vector.shape_cast %21 : vector<4x16x8xf32> to vector<8x8x8xf32>
    "tpu.trace_start"() <{level = 10 : i32, message = "ckd,cxd->ckx"}> : () -> ()
    %cst_26 = arith.constant dense<0.000000e+00> : vector<8x8x8xf32>
    %30 = tpu.matmul %27, %28, %cst_26 {dimension_numbers = #tpu.dot_dimension_numbers<[2], [2], [1], [1], [0, 0, 0, 1, 1, 1], [0], [0]>} : vector<8x8x8xf32>, vector<8x8x8xf32>, vector<8x8x8xf32> -> vector<8x8x8xf32>
    "tpu.trace_stop"() : () -> ()
    %31 = vector.shape_cast %30 : vector<8x8x8xf32> to vector<4x2x8x8xf32>
    %32 = vector.shape_cast %25 : vector<2x8xf32> to vector<1x2x1x8xf32>
    %33 = vector.broadcast %32 : vector<1x2x1x8xf32> to vector<4x2x8x8xf32>
    %34 = arith.addf %31, %33 : vector<4x2x8x8xf32>
    %35 = vector.shape_cast %34 : vector<4x2x8x8xf32> to vector<8x8x8xf32>
    %cst_27 = arith.constant dense<0xFF800000> : vector<4x16xf32>
    %36 = vector.multi_reduction <maximumf>, %26, %cst_27 [2] : vector<4x16x8xf32> to vector<4x16xf32>
    %37 = vector.shape_cast %36 : vector<4x16xf32> to vector<4x16x1xf32>
    %38 = vector.shape_cast %37 : vector<4x16x1xf32> to vector<8x8x1xf32>
    %cst_28 = arith.constant dense<0xFF800000> : vector<8x8xf32>
    %39 = vector.multi_reduction <maximumf>, %35, %cst_28 [2] : vector<8x8x8xf32> to vector<8x8xf32>
    %40 = vector.shape_cast %39 : vector<8x8xf32> to vector<8x8x1xf32>
    %41 = arith.maximumf %38, %40 : vector<8x8x1xf32>
    %42 = vector.broadcast %41 : vector<8x8x1xf32> to vector<8x8x8xf32>
    %43 = arith.subf %35, %42 : vector<8x8x8xf32>
    %44 = math.exp %43 : vector<8x8x8xf32>
    %45 = vector.shape_cast %41 : vector<8x8x1xf32> to vector<4x16x1xf32>
    %46 = vector.broadcast %45 : vector<4x16x1xf32> to vector<4x16x8xf32>
    %47 = arith.subf %26, %46 : vector<4x16x8xf32>
    %48 = math.exp %47 : vector<4x16x8xf32>
    %cst_29 = arith.constant dense<0.000000e+00> : vector<4x16xf32>
    %49 = vector.multi_reduction <add>, %48, %cst_29 [2] : vector<4x16x8xf32> to vector<4x16xf32>
    %50 = vector.shape_cast %49 : vector<4x16xf32> to vector<4x16x1xf32>
    %cst_30 = arith.constant dense<0.000000e+00> : vector<8x8xf32>
    %51 = vector.multi_reduction <add>, %44, %cst_30 [2] : vector<8x8x8xf32> to vector<8x8xf32>
    %52 = vector.shape_cast %51 : vector<8x8xf32> to vector<8x8x1xf32>
    %53 = vector.shape_cast %52 : vector<8x8x1xf32> to vector<4x16x1xf32>
    %54 = arith.addf %50, %53 : vector<4x16x1xf32>
    %55 = tpu.reciprocal %54 : vector<4x16x1xf32> -> vector<4x16x1xf32>
    "tpu.trace_start"() <{level = 10 : i32, message = "htg,hgd->htd"}> : () -> ()
    %cst_31 = arith.constant dense<0.000000e+00> : vector<4x16x8xf32>
    %56 = tpu.matmul %48, %5, %cst_31 {dimension_numbers = #tpu.dot_dimension_numbers<[2], [1], [1], [2], [0, 0, 0, 1, 1, 2], [0], [0]>} : vector<4x16x8xf32>, vector<4x8x8xf32>, vector<4x16x8xf32> -> vector<4x16x8xf32>
    "tpu.trace_stop"() : () -> ()
    "tpu.trace_start"() <{level = 10 : i32, message = "ckx,cxd->ckd"}> : () -> ()
    %cst_32 = arith.constant dense<0.000000e+00> : vector<8x8x8xf32>
    %57 = tpu.matmul %44, %29, %cst_32 {dimension_numbers = #tpu.dot_dimension_numbers<[2], [1], [1], [2], [0, 0, 0, 1, 1, 2], [0], [0]>} : vector<8x8x8xf32>, vector<8x8x8xf32>, vector<8x8x8xf32> -> vector<8x8x8xf32>
    "tpu.trace_stop"() : () -> ()
    %58 = vector.shape_cast %57 : vector<8x8x8xf32> to vector<4x16x8xf32>
    %59 = arith.addf %56, %58 : vector<4x16x8xf32>
    %60 = vector.broadcast %55 : vector<4x16x1xf32> to vector<4x16x8xf32>
    %61 = arith.mulf %59, %60 : vector<4x16x8xf32>
    %62 = tpu.transpose %61, [1, 0, 2] : vector<4x16x8xf32> -> vector<16x4x8xf32>
    %63 = vector.shape_cast %62 : vector<16x4x8xf32> to vector<16x32xf32>
    %c0_33 = arith.constant 0 : index
    %c0_34 = arith.constant 0 : index
    %64 = vector.load %arg9[%c0_33, %c0_34] : memref<32x32xf32, #tpu.memory_space<vmem>>, vector<32x32xf32>
    %cst_35 = arith.constant dense<0.000000e+00> : vector<16x32xf32>
    %65 = tpu.matmul %63, %64, %cst_35 {dimension_numbers = #tpu.dot_dimension_numbers<[1], [0], [0], [1], [0, 0, 1, 1], [], []>} : vector<16x32xf32>, vector<32x32xf32>, vector<16x32xf32> -> vector<16x32xf32>
    %c0_36 = arith.constant 0 : index
    %c0_37 = arith.constant 0 : index
    %c0_38 = arith.constant 0 : index
    %66 = vector.load %arg10[%c0_36, %c0_37, %c0_38] : memref<1x16x32xf32, #tpu.memory_space<vmem>>, vector<1x16x32xf32>
    %67 = vector.shape_cast %66 : vector<1x16x32xf32> to vector<16x32xf32>
    %68 = vector.shape_cast %65 : vector<16x32xf32> to vector<1x16x32xf32>
    tpu.vector_store %arg10[%c0_36, %c0_37, %c0_38], %68 {strides = array<i32>} : memref<1x16x32xf32, #tpu.memory_space<vmem>>, vector<1x16x32xf32>,
    "tpu.trace_start"() <{level = 10 : i32, message = "hgd,htd->hgt"}> : () -> ()
    %cst_39 = arith.constant dense<0.000000e+00> : vector<4x8x16xf32>
    %69 = tpu.matmul %1, %18, %cst_39 {dimension_numbers = #tpu.dot_dimension_numbers<[2], [2], [1], [1], [0, 0, 0, 1, 1, 1], [0], [0]>} : vector<4x8x8xf32>, vector<4x16x8xf32>, vector<4x8x16xf32> -> vector<4x8x16xf32>
    "tpu.trace_stop"() : () -> ()
    %70 = vector.shape_cast %23 : vector<1x16xf32> to vector<1x1x16xf32>
    %71 = vector.broadcast %70 : vector<1x1x16xf32> to vector<4x8x16xf32>
    %72 = arith.addf %69, %71 : vector<4x8x16xf32>
    %c0_40 = arith.constant 0 : index
    %c0_41 = arith.constant 0 : index
    %c0_42 = arith.constant 0 : index
    %73 = vector.load %arg12[%c0_40, %c0_41, %c0_42] : memref<4x8x1xf32, #tpu.memory_space<vmem>>, vector<4x8x1xf32>
    %cst_43 = arith.constant dense<0xFF800000> : vector<4x8xf32>
    %74 = vector.multi_reduction <maximumf>, %72, %cst_43 [2] : vector<4x8x16xf32> to vector<4x8xf32>
    %75 = vector.shape_cast %74 : vector<4x8xf32> to vector<4x8x1xf32>
    %76 = arith.maximumf %73, %75 : vector<4x8x1xf32>
    %77 = arith.subf %73, %76 : vector<4x8x1xf32>
    %78 = math.exp %77 : vector<4x8x1xf32>
    %79 = vector.broadcast %76 : vector<4x8x1xf32> to vector<4x8x16xf32>
    %80 = arith.subf %72, %79 : vector<4x8x16xf32>
    %81 = math.exp %80 : vector<4x8x16xf32>
    %c0_44 = arith.constant 0 : index
    %c0_45 = arith.constant 0 : index
    %c0_46 = arith.constant 0 : index
    %82 = vector.load %arg13[%c0_44, %c0_45, %c0_46] : memref<4x8x1xf32, #tpu.memory_space<vmem>>, vector<4x8x1xf32>
    %83 = arith.mulf %78, %82 : vector<4x8x1xf32>
    %cst_47 = arith.constant dense<0.000000e+00> : vector<4x8xf32>
    %84 = vector.multi_reduction <add>, %81, %cst_47 [2] : vector<4x8x16xf32> to vector<4x8xf32>
    %85 = vector.shape_cast %84 : vector<4x8xf32> to vector<4x8x1xf32>
    %86 = arith.addf %83, %85 : vector<4x8x1xf32>
    %c0_48 = arith.constant 0 : index
    %c0_49 = arith.constant 0 : index
    %c0_50 = arith.constant 0 : index
    %87 = vector.load %arg13[%c0_48, %c0_49, %c0_50] : memref<4x8x1xf32, #tpu.memory_space<vmem>>, vector<4x8x1xf32>
    tpu.vector_store %arg13[%c0_48, %c0_49, %c0_50], %86 {strides = array<i32>} : memref<4x8x1xf32, #tpu.memory_space<vmem>>, vector<4x8x1xf32>,
    %c0_51 = arith.constant 0 : index
    %c0_52 = arith.constant 0 : index
    %c0_53 = arith.constant 0 : index
    %88 = vector.load %arg14[%c0_51, %c0_52, %c0_53] : memref<4x8x8xf32, #tpu.memory_space<vmem>>, vector<4x8x8xf32>
    %89 = vector.broadcast %78 : vector<4x8x1xf32> to vector<4x8x8xf32>
    %90 = arith.mulf %89, %88 : vector<4x8x8xf32>
    "tpu.trace_start"() <{level = 10 : i32, message = "hgt,htd->hgd"}> : () -> ()
    %cst_54 = arith.constant dense<0.000000e+00> : vector<4x8x8xf32>
    %91 = tpu.matmul %81, %21, %cst_54 {dimension_numbers = #tpu.dot_dimension_numbers<[2], [1], [1], [2], [0, 0, 0, 1, 1, 2], [0], [0]>} : vector<4x8x16xf32>, vector<4x16x8xf32>, vector<4x8x8xf32> -> vector<4x8x8xf32>
    "tpu.trace_stop"() : () -> ()
    %92 = arith.addf %90, %91 : vector<4x8x8xf32>
    %c0_55 = arith.constant 0 : index
    %c0_56 = arith.constant 0 : index
    %c0_57 = arith.constant 0 : index
    %93 = vector.load %arg14[%c0_55, %c0_56, %c0_57] : memref<4x8x8xf32, #tpu.memory_space<vmem>>, vector<4x8x8xf32>
    tpu.vector_store %arg14[%c0_55, %c0_56, %c0_57], %92 {strides = array<i32>} : memref<4x8x8xf32, #tpu.memory_space<vmem>>, vector<4x8x8xf32>,
    %c0_58 = arith.constant 0 : index
    %c0_59 = arith.constant 0 : index
    %c0_60 = arith.constant 0 : index
    %94 = vector.load %arg12[%c0_58, %c0_59, %c0_60] : memref<4x8x1xf32, #tpu.memory_space<vmem>>, vector<4x8x1xf32>
    tpu.vector_store %arg12[%c0_58, %c0_59, %c0_60], %76 {strides = array<i32>} : memref<4x8x1xf32, #tpu.memory_space<vmem>>, vector<4x8x1xf32>,
    %c1_i32 = arith.constant 1 : i32
    %95 = arith.cmpi eq, %arg1, %c1_i32 : i32
    %96 = arith.extui %95 : i1 to i32
    %c0_i32_61 = arith.constant 0 : i32
    %97 = arith.cmpi ne, %96, %c0_i32_61 : i32
    scf.if %97 {
      %c0_62 = arith.constant 0 : index
      %c0_63 = arith.constant 0 : index
      %c0_64 = arith.constant 0 : index
      %98 = vector.load %arg14[%c0_62, %c0_63, %c0_64] : memref<4x8x8xf32, #tpu.memory_space<vmem>>, vector<4x8x8xf32>
      %c0_65 = arith.constant 0 : index
      %c0_66 = arith.constant 0 : index
      %c0_67 = arith.constant 0 : index
      %99 = vector.load %arg13[%c0_65, %c0_66, %c0_67] : memref<4x8x1xf32, #tpu.memory_space<vmem>>, vector<4x8x1xf32>
      %100 = tpu.reciprocal %99 : vector<4x8x1xf32> -> vector<4x8x1xf32>
      %101 = vector.broadcast %100 : vector<4x8x1xf32> to vector<4x8x8xf32>
      %102 = arith.mulf %98, %101 : vector<4x8x8xf32>
      %103 = tpu.transpose %102, [1, 0, 2] : vector<4x8x8xf32> -> vector<8x4x8xf32>
      %104 = vector.shape_cast %103 : vector<8x4x8xf32> to vector<8x32xf32>
      %c0_68 = arith.constant 0 : index
      %c0_69 = arith.constant 0 : index
      %105 = vector.load %arg9[%c0_68, %c0_69] : memref<32x32xf32, #tpu.memory_space<vmem>>, vector<32x32xf32>
      %cst_70 = arith.constant dense<0.000000e+00> : vector<8x32xf32>
      %106 = tpu.matmul %104, %105, %cst_70 {dimension_numbers = #tpu.dot_dimension_numbers<[1], [0], [0], [1], [0, 0, 1, 1], [], []>} : vector<8x32xf32>, vector<32x32xf32>, vector<8x32xf32> -> vector<8x32xf32>
      %c0_71 = arith.constant 0 : index
      %c0_72 = arith.constant 0 : index
      %c0_73 = arith.constant 0 : index
      %107 = vector.load %arg11[%c0_71, %c0_72, %c0_73] : memref<1x8x32xf32, #tpu.memory_space<vmem>>, vector<1x8x32xf32>
      %108 = vector.shape_cast %107 : vector<1x8x32xf32> to vector<8x32xf32>
      %109 = vector.shape_cast %106 : vector<8x32xf32> to vector<1x8x32xf32>
      tpu.vector_store %arg11[%c0_71, %c0_72, %c0_73], %109 {strides = array<i32>} : memref<1x8x32xf32, #tpu.memory_space<vmem>>, vector<1x8x32xf32>,
    } else {
    }
    return
  }
  func.func @transform_0(%arg0: i32, %arg1: i32) -> (i32, i32, i32) {
    %c0_i32 = arith.constant 0 : i32
    %c0_i32_0 = arith.constant 0 : i32
    return %arg0, %arg1, %c0_i32 : i32, i32, i32
  }
  func.func @transform_1(%arg0: i32, %arg1: i32) -> (i32, i32, i32, i32) {
    %c0_i32 = arith.constant 0 : i32
    %c0_i32_0 = arith.constant 0 : i32
    %c0_i32_1 = arith.constant 0 : i32
    return %arg0, %arg1, %c0_i32, %c0_i32_0 : i32, i32, i32, i32
  }
  func.func @transform_2(%arg0: i32, %arg1: i32) -> (i32, i32, i32, i32) {
    %c0_i32 = arith.constant 0 : i32
    %c0_i32_0 = arith.constant 0 : i32
    %c0_i32_1 = arith.constant 0 : i32
    return %arg0, %arg1, %c0_i32, %c0_i32_0 : i32, i32, i32, i32
  }
  func.func @transform_3(%arg0: i32, %arg1: i32) -> (i32, i32, i32, i32) {
    %c0_i32 = arith.constant 0 : i32
    %c0_i32_0 = arith.constant 0 : i32
    %c0_i32_1 = arith.constant 0 : i32
    %c0_i32_2 = arith.constant 0 : i32
    return %arg0, %c0_i32, %c0_i32_0, %c0_i32_1 : i32, i32, i32, i32
  }
  func.func @transform_4(%arg0: i32, %arg1: i32) -> (i32, i32, i32, i32) {
    %c0_i32 = arith.constant 0 : i32
    %c0_i32_0 = arith.constant 0 : i32
    %c0_i32_1 = arith.constant 0 : i32
    %c0_i32_2 = arith.constant 0 : i32
    return %arg0, %c0_i32, %c0_i32_0, %c0_i32_1 : i32, i32, i32, i32
  }
  func.func @transform_5(%arg0: i32, %arg1: i32) -> (i32, i32, i32, i32) {
    %c0_i32 = arith.constant 0 : i32
    %c0_i32_0 = arith.constant 0 : i32
    %c0_i32_1 = arith.constant 0 : i32
    %c0_i32_2 = arith.constant 0 : i32
    return %arg0, %c0_i32, %c0_i32_0, %c0_i32_1 : i32, i32, i32, i32
  }
  func.func @transform_6(%arg0: i32, %arg1: i32) -> (i32, i32) {
    %c0_i32 = arith.constant 0 : i32
    %c0_i32_0 = arith.constant 0 : i32
    %c0_i32_1 = arith.constant 0 : i32
    return %c0_i32, %c0_i32_0 : i32, i32
  }
  func.func @transform_7(%arg0: i32, %arg1: i32) -> (i32, i32) {
    %c0_i32 = arith.constant 0 : i32
    %c0_i32_0 = arith.constant 0 : i32
    %c0_i32_1 = arith.constant 0 : i32
    return %c0_i32, %c0_i32_0 : i32, i32
  }
  func.func @transform_8(%arg0: i32, %arg1: i32) -> (i32, i32, i32) {
    %c0_i32 = arith.constant 0 : i32
    %c0_i32_0 = arith.constant 0 : i32
    return %arg0, %arg1, %c0_i32 : i32, i32, i32
  }
  func.func @transform_9(%arg0: i32, %arg1: i32) -> (i32, i32, i32) {
    %c0_i32 = arith.constant 0 : i32
    %c0_i32_0 = arith.constant 0 : i32
    %c0_i32_1 = arith.constant 0 : i32
    return %arg0, %c0_i32, %c0_i32_0 : i32, i32, i32
  }
}

</mosaic_0001>

<bundles_post_ra>
// kernel: tpu_custom_call.1
= control target key start
LH: loop header
LB: loop body
LE: loop exit
PB: predicated region body
PF: predicated region fallthrough
CT: control target
= control target key end

     0   :  { %s8396_s0 = inlined_call_operand.hbm [shape: f32[2,32,32], index: 0, kind: input, shape index: {}]   ;;  %s8397_s1 = inlined_call_operand.hbm [shape: f32[2,2,1,16], index: 1, kind: input, shape index: {}]   ;;  %s8398_s2 = inlined_call_operand.hbm [shape: f32[2,2,2,8], index: 2, kind: input, shape index: {}]   ;;  %s8399_s3 = inlined_call_operand.hbm [shape: f32[2,4,8,8], index: 3, kind: input, shape index: {}]   ;;  %s8400_s4 = inlined_call_operand.hbm [shape: f32[2,4,8,8], index: 4, kind: input, shape index: {}]   ;;  %s8401_s5 = inlined_call_operand.hbm [shape: f32[2,4,8,8], index: 5, kind: input, shape index: {}]   ;;  %s8402_s6 = inlined_call_operand.hbm [shape: f32[32,96], index: 6, kind: input, shape index: {}]   ;;  %s8403_s7 = inlined_call_operand.hbm [shape: f32[32,32], index: 7, kind: input, shape index: {}]   ;;  %s8404_s8 = inlined_call_operand.hbm [shape: f32[2,32,32], index: 8, kind: output, shape index: {0}]   ;;  %s8405_s9 = inlined_call_operand.hbm [shape: f32[2,8,32], index: 9, kind: output, shape index: {1}]  }
   0x1   :  { %8440 = sst [smem:[#allocation44_spill]] %s8396_s0 }
   0x2   :  { %8441 = sst [smem:[#allocation45_spill]] %s8397_s1 }
   0x3   :  { %8442 = sst [smem:[#allocation46_spill]] %s8398_s2 }
   0x4   :  { %8443 = sst [smem:[#allocation47_spill]] %s8399_s3 }
   0x5   :  { %8444 = sst [smem:[#allocation48_spill]] %s8400_s4 }
   0x6   :  { %8445 = sst [smem:[#allocation49_spill]] %s8401_s5 }
   0x7   :  { %8446 = sst [smem:[#allocation50_spill]] %s8402_s6 }
   0x8   :  { %8447 = sst [smem:[#allocation51_spill]] %s8403_s7 }
   0x9   :  { %8448 = sst [smem:[#allocation52_spill]] %s8404_s8 }
   0xa   :  { %8449 = sst [smem:[#allocation53_spill]] %s8405_s9 }
   0xb   :  { %15 = vsyncpa [#allocation6], 0 }
   0xc   :  { %17 = vsyncpa [#allocation6 + $0x1], 0 }
   0xd   :  { %18 = vsyncpa [#allocation9], 0 }
   0xe   :  { %20 = vsyncpa [#allocation9 + $0x1], 0 }
   0xf   :  { %21 = vsyncpa [#allocation12], 0 }
  0x10   :  { %22 = vsyncpa [#allocation15], 0 }
  0x11   :  { %23 = vsyncpa [#allocation18], 0 }
  0x12   :  { %24 = vsyncpa [#allocation7], 0 }
  0x13   :  { %26 = vsyncpa [#allocation7 + $0x1], 0 }
  0x14   :  { %27 = vsyncpa [#allocation21], 0 }
  0x15   :  { %29 = vsyncpa [#allocation21 + $0x1], 0  ;;  %s7116_s30 = smov 0   ;;  %s7118_s10 = smov 0  }
  0x16   :  { %s7120_s11 = smov 0   ;;  %s7122_s12 = smov 0  }
  0x17   :  { %s7124_s13 = smov 0   ;;  %s7126_s14 = smov 0  }
  0x18   :  { %s7128_s15 = smov 0   ;;  %s7130_s16 = smov 0  }
  0x19   :  { %s7132_s17 = smov 0   ;;  %s7134_s18 = smov 0  }
  0x1a   :  { %s7136_s19 = smov 0  }
  0x1b LB: > { %8450 = sst [smem:[#allocation30_spill]] %s6989_s30  ;;  %s7172_s20 = sadd.s32 4294967295, %s7029_s19   ;;  %s7029_s19 = sphi %s7136_s19, %s35_s19   ;;  %s7025_s18 = sphi %s7134_s18, %s8533_s18   ;;  %s7021_s17 = sphi %s7132_s17, %s8532_s17   ;;  %s7017_s16 = sphi %s7130_s16, %s8531_s16   ;;  %s7013_s15 = sphi %s7128_s15, %s8530_s15   ;;  %s7009_s14 = sphi %s7126_s14, %s8523_s14   ;;  %s7005_s13 = sphi %s7124_s13, %s8529_s13   ;;  %s7001_s12 = sphi %s7122_s12, %s8528_s12   ;;  %s6997_s11 = sphi %s7120_s11, %s8521_s11   ;;  %s6993_s10 = sphi %s7118_s10, %s8527_s10   ;;  %s6989_s30 = sphi %s7116_s30, %s8526_s30  }
  0x1c   : > { %8451 = sst [smem:[#allocation31_spill]] %s6997_s11  ;;  %p8413_p0 = scmp.ne.s32.totalorder %s6993_s10, %s6989_s30 }
  0x1d   : > { %8452 = sst [smem:[#allocation32_spill]] %s7001_s12  ;;  %p8414_p1 = scmp.eq.s32.totalorder %s7172_s20, 0 }
  0x1e   : > { %8453 = sst [smem:[#allocation33_spill]] %s7009_s14  ;;  %p5876_p3 = scmp.ge.s32.totalorder %s7029_s19, 1 }
  0x1f   : > { %8454 = sst [smem:[#allocation34_spill]] %s7013_s15  ;;  %p310_p4 = scmp.lt.s32.totalorder %s7029_s19, 5 }
  0x20   : > { %8455 = sst [smem:[#allocation35_spill]] %s7017_s16  ;;  %p7186_p5 = por %p8413_p0, %p8414_p1 }
  0x21   : > { %8456 = sst [smem:[#allocation36_spill]] %s7029_s19  ;;  %s7191_s22 = sshll.u32 %s7017_s16, 9 }
  0x22   : > { %s8457_s21 = scalar_select %p7186_p5, 1, 0 }
  0x23   : > { %p7193_p6 = pnand %p5876_p3, %p310_p4  ;;  %s8460_s3 = sld [smem:[#allocation47_spill]] }
  0x24   : > { %8458 = sst [smem:[#allocation37_spill]] %s8457_s21  ;;  %s7031_s27 = smov [#allocation11]  }
  0x25   : > { %s8459_s23 = scalar_select %p7193_p6, 1, 0 }
  0x26   : > { %p8412_p7 = pneg %p7193_p6  ;;  %s325_s28 = sshll.u32 %s7031_s27, 4  ;;  %s326_s28 = int_to_ptr.vmem [resolvable:$true] %s325_s28 }
  0x27   : > { %s8462_s5 = sld [smem:[#allocation49_spill]] }
  0x28   : > { %p7210_p8 = pnand %p8412_p7, %p7186_p5 }
  0x29   : > { %s7201_s26 = scalar_lea.hbm %s8460_s3, %s7191_s22  ;;  %s6644_s21 = scalar_lea.hbm %s8460_s3, 1024 }
  0x2a   : > { %s8461_s29 = scalar_select %p7210_p8, 1, 0 }
  0x2b   : > { %s6639_s8 = scalar_lea.hbm %s7201_s26, 512  ;;  %p7224_p10 = pneg %p7210_p8 }
  0x2c   : > { %p6640_p9 = scmp.ne.s32.totalorder %s7201_s26, %s6639_s8  ;;  %p6645_p13 = scmp.lt.s32.totalorder %s7201_s26, %s8460_s3 }
  0x2d   : > { %s7218_s9 = scalar_lea.hbm %s8462_s5, %s7191_s22  ;;  %p6646_p3 = scmp.lt.s32.totalorder %s6644_s21, %s6639_s8 }
  0x2e   : > { %p6642_p11 = pnand %p7224_p10, %p6640_p9 }
  0x2f   : > { %p6647_p4 = por %p6646_p3, %p6645_p13 }
  0x30   : > { %p6643_p12 = pneg %p6642_p11 }
  0x32   : > { %p6648_p7 = pnand %p6647_p4, %p6643_p12 }
  0x34   : > { %6651 = shalt.err (!%p6648_p7)
}
  0x35   : > { %s6652_s25 = scalar_lea.vmem %s326_s28, 512  ;;  %p6660_p9 = scmp.lt.s32.totalorder %s326_s28, %s326_s28 }
  0x36   : > { %p6653_p0 = scmp.ne.s32.totalorder %s326_s28, %s6652_s25  ;;  %p6661_p11 = scmp.lt.s32.totalorder %s6652_s25, %s6652_s25 }
  0x38   : > { %p6655_p2 = pnand %p6653_p0, %p7224_p10  ;;  %p6662_p5 = por %p6661_p11, %p6660_p9 }
  0x3a   : > { %p6656_p1 = pneg %p6655_p2 }
  0x3c   : > { %p6663_p6 = pnand %p6662_p5, %p6656_p1 }
  0x3e   : > { %6666 = shalt.err (!%p6663_p6)
}
  0x3f   : > { %s8419_s15 = smov 128   ;;  %s8421_s2 = smov 8  }
  0x40   : > { %6401 = dma.hbm_to_vmem [thread:$0]  (!%p7210_p8), %s7201_s26, 512, %s326_s28, [#allocation12], %s8419_s15, %s8419_s15, %s8421_s2  }
  0x41   : > { %s7034_s8 = smov [#allocation14]   ;;  %s6667_s27 = scalar_lea.hbm %s7218_s9, 512 }
  0x42   : > { %s357_s21 = sshll.u32 %s7034_s8, 4  ;;  %p6668_p0 = scmp.ne.s32.totalorder %s7218_s9, %s6667_s27  ;;  %s358_s21 = int_to_ptr.vmem [resolvable:$true] %s357_s21 }
  0x43   : > { %s6672_s3 = scalar_lea.hbm %s8462_s5, 1024  ;;  %p6673_p5 = scmp.lt.s32.totalorder %s7218_s9, %s8462_s5 }
  0x44   : > { %p6670_p1 = pnand %p6668_p0, %p7224_p10  ;;  %p6674_p6 = scmp.lt.s32.totalorder %s6672_s3, %s6667_s27 }
  0x46   : > { %p6671_p2 = pneg %p6670_p1  ;;  %p6675_p7 = por %p6674_p6, %p6673_p5 }
  0x48   : > { %p6676_p12 = pnand %p6675_p7, %p6671_p2 }
  0x4a   : > { %6679 = shalt.err (!%p6676_p12)
}
  0x4b   : > { %s6680_s26 = scalar_lea.vmem %s358_s21, 512  ;;  %p6688_p9 = scmp.lt.s32.totalorder %s358_s21, %s358_s21 }
  0x4c   : > { %p6681_p13 = scmp.ne.s32.totalorder %s358_s21, %s6680_s26  ;;  %p6689_p11 = scmp.lt.s32.totalorder %s6680_s26, %s6680_s26 }
  0x4e   : > { %p6683_p3 = pnand %p6681_p13, %p7224_p10  ;;  %p6690_p0 = por %p6689_p11, %p6688_p9 }
  0x50   : > { %p6684_p4 = pneg %p6683_p3 }
  0x52   : > { %p6691_p1 = pnand %p6690_p0, %p6684_p4 }
  0x54   : > { %6694 = shalt.err (!%p6691_p1)
}
  0x55   : > { %6407 = dma.hbm_to_vmem [thread:$0]  (!%p7210_p8), %s7218_s9, 512, %s358_s21, [#allocation15], %s8419_s15, %s8419_s15, %s8421_s2  }
  0x56   : > { %s5875_s0 = sadd.s32 4294967294, %s7029_s19   ;;  %s44_s3 = sadd.s32 1, %s7021_s17 }
  0x57   : > { %p45_p2 = scmp.ge.s32.totalorder %s44_s3, 2  ;;  %s47_s7 = sadd.s32 1, %s7025_s18 }
  0x58   : > { %s56_s28 = sadd.s32 1, %s7009_s14  ;;  %p63_p5 = scmp.ne.s32.totalorder %s7009_s14, %s7005_s13 }
  0x59   : > { %s8535_s3 = smov (%p45_p2, %s44_s3), 0  ;;  %s8537_s7 = smov (!%p45_p2, %s47_s7), %s7025_s18 }
  0x5a   : > { %8464 = sst [smem:[#allocation38_spill]] %s8535_s3  ;;  %s52_s8 = ssub.s32 %s7021_s17, %s8535_s3 }
  0x5b   : > { %p64_p6 = scmp.eq.s32.totalorder %s7029_s19, 0  ;;  %p49_p7 = scmp.ge.s32.totalorder %s8537_s7, 2 }
  0x5c   : > { %p69_p12 = scmp.ne.s32.totalorder %s7005_s13, %s7001_s12  ;;  %s138_s21 = sadd.s32 1, %s6997_s11 }
  0x5d   : > { %p7281_p13 = por %p64_p6, %p63_p5  ;;  %s8539_s7 = smov (%p49_p7, %s8537_s7), 0 }
  0x5e   : > { %8466 = sst [smem:[#allocation39_spill]] %s8539_s7  ;;  %p8467_p3 = scmp.eq.s32.totalorder %s7172_s20, 0 }
  0x5f   : > { %p271_p9 = scmp.eq.s32.totalorder %s7172_s20, 3  ;;  %s51_s24 = ssub.s32 %s7025_s18, %s8539_s7 }
  0x60   : > { %p7293_p4 = por %p8467_p3, %p69_p12  ;;  %p277_p11 = scmp.eq.s32.totalorder %s5875_s0, 3 }
  0x61   : > { %s53_s25 = sor.u32 %s52_s8, %s51_s24  ;;  %p136_p0 = scmp.eq.s32.totalorder %s51_s24, 0 }
  0x62   : > { %s8468_s27 = scalar_select %p7293_p4, 1, 0 }
  0x63   : > { %p54_p1 = scmp.eq.s32.totalorder %s53_s25, 0  ;;  %p7303_p2 = por %p271_p9, %p63_p5 }
  0x64   : > { %s7308_s15 = scalar_select %p136_p0, %s6997_s11, %s138_s21  }
  0x65   : > { %s8469_s26 = scalar_select %p7303_p2, 1, 0 }
  0x66   : > { %8470 = sst [smem:[#allocation40_spill]] %s7308_s15  ;;  %p7316_p6 = por %p277_p11, %p69_p12 }
  0x67   : > { %s7311_s2 = scalar_select %p54_p1, %s7009_s14, %s56_s28  }
  0x68   : > { %s8472_s5 = scalar_select %p7316_p6, 1, 0 }
  0x69   : > { %8471 = sst [smem:[#allocation41_spill]] %s7311_s2  ;;  %p8474_p7 = scmp.ne.s32.totalorder %s6997_s11, %s6993_s10 }
  0x6a   : > { %8473 = sst [smem:[#allocation42_spill]] %s8472_s5  ;;  %p8476_p4 = scmp.ne.s32.totalorder %s6993_s10, %s6989_s30 }
  0x6b   : > { %p7323_p3 = por %p8474_p7, %p271_p9  ;;  %p6433_p5 = scmp.lt.s32.totalorder %s7029_s19, 4 }
  0x6c   : > { %p7330_p8 = por %p277_p11, %p8476_p4  ;;  %s7336_s21 = sand.u32 1, %s7009_s14  }
  0x6d   : > { %s8475_s0 = scalar_select %p7323_p3, 1, 0 }
  0x6e   : > { %s8477_s8 = scalar_select %p7330_p8, 1, 0 }
  0x6f   : > { %s420_s28 = sand.u32 1, %s7029_s19   ;;  %p7341_p12 = pnand %p6433_p5, %p7281_p13 }
  0x70   : > { %8478 = sst [smem:[#allocation43_spill]] %s8477_s8  ;;  %s5890_s25 = sshll.u32 %s7025_s18, 1 }
  0x71   : > { %s8479_s24 = scalar_select %p7341_p12, 1, 0 }
  0x72   : > { %s7347_s7 = sadd.s32 %s7021_s17, %s5890_s25  ;;  %s423_s2 = scalar_lea.vmem [#allocation8], %s7336_s21 }
  0x73   : > { %s5891_s3 = sshll.u32 %s7347_s7, 4  ;;  %s432_s15 = sshll.u32 %s423_s2, 4  ;;  %s433_s15 = int_to_ptr.vmem [resolvable:$true] %s432_s15 }
  0x74   : > { %s8480_s1 = sld [smem:[#allocation45_spill]]  ;;  %s7354_s30 = scalar_lea.sflag [#allocation9], %s420_s28 }
  0x75   : > { %p8433_p13 = pneg %p7341_p12  ;;  %s6708_s9 = scalar_lea.vmem %s433_s15, 16 }
  0x76   : > { %p6709_p4 = scmp.ne.s32.totalorder %s433_s15, %s6708_s9  ;;  %s7035_s25 = smov [#allocation8]  }
  0x77   : > { %s6713_s5 = sshll.u32 %s7035_s25, 4  ;;  %s6714_s5 = int_to_ptr.vmem [resolvable:$false] %s6713_s5 }
  0x78   : > { %p6711_p9 = pnand %p6709_p4, %p8433_p13  ;;  %s6715_s12 = scalar_lea.vmem %s6714_s5, 32 }
  0x79   : > { %p6716_p0 = scmp.lt.s32.totalorder %s433_s15, %s6714_s5  ;;  %p6717_p1 = scmp.lt.s32.totalorder %s6715_s12, %s6708_s9 }
  0x7a   : > { %s430_s14 = scalar_lea.hbm %s8480_s1, %s5891_s3  ;;  %p6712_p11 = pneg %p6711_p9 }
  0x7b   : > { %p6718_p7 = por %p6717_p1, %p6716_p0 }
  0x7d   : > { %p6719_p5 = pnand %p6718_p7, %p6712_p11 }
  0x7f   : > { %6722 = shalt.err (!%p6719_p5)
}
  0x80   : > { %6420 = dma.hbm_to_vmem [thread:$0]  (!%p7341_p12), %s430_s14, 16, %s433_s15, %s7354_s30  }
  0x81   : > { %s8481_s4 = sld [smem:[#allocation48_spill]]  ;;  %s7036_s5 = smov [#allocation13]  }
  0x82   : > { %s341_s12 = sshll.u32 %s7036_s5, 4  ;;  %s7037_s28 = smov [#allocation16]   ;;  %s342_s12 = int_to_ptr.vmem [resolvable:$true] %s341_s12 }
  0x83   : > { %s370_s9 = sshll.u32 %s7037_s28, 4  ;;  %s7371_s9 = int_to_ptr.vmem [resolvable:$true] %s370_s9 }
  0x87   : > { %s7369_s8 = scalar_lea.hbm %s8481_s4, %s7191_s22  ;;  %s6728_s22 = scalar_lea.hbm %s8481_s4, 1024 }
  0x88   : > { %s6723_s25 = scalar_lea.hbm %s7369_s8, 512  ;;  %p6729_p0 = scmp.lt.s32.totalorder %s7369_s8, %s8481_s4 }
  0x89   : > { %p6724_p4 = scmp.ne.s32.totalorder %s7369_s8, %s6723_s25  ;;  %p6730_p1 = scmp.lt.s32.totalorder %s6728_s22, %s6723_s25 }
  0x8b   : > { %p6726_p9 = pnand %p6724_p4, %p7224_p10  ;;  %p6731_p7 = por %p6730_p1, %p6729_p0 }
  0x8d   : > { %p6727_p11 = pneg %p6726_p9 }
  0x8f   : > { %p6732_p5 = pnand %p6731_p7, %p6727_p11 }
  0x91   : > { %6735 = shalt.err (!%p6732_p5)
}
  0x92   : > { %s6736_s5 = scalar_lea.vmem %s342_s12, 512  ;;  %p6744_p4 = scmp.lt.s32.totalorder %s342_s12, %s342_s12 }
  0x93   : > { %p6737_p13 = scmp.ne.s32.totalorder %s342_s12, %s6736_s5  ;;  %p6745_p9 = scmp.lt.s32.totalorder %s6736_s5, %s6736_s5 }
  0x95   : > { %p6739_p8 = pnand %p6737_p13, %p7224_p10  ;;  %p6746_p3 = por %p6745_p9, %p6744_p4 }
  0x97   : > { %p6740_p6 = pneg %p6739_p8 }
  0x99   : > { %p6747_p2 = pnand %p6746_p3, %p6740_p6 }
  0x9b   : > { %6750 = shalt.err (!%p6747_p2)
}
  0x9c   : > { %p8482_p12 = scmp.ne.s32.totalorder %s8461_s29, 0  ;;  %s8483_s28 = smov 8  }
  0x9d   : > { %s8484_s14 = smov 128   ;;  %p8485_p11 = scmp.eq.s32.totalorder %s7172_s20, 0 }
  0x9e   : > { %6404 = dma.hbm_to_vmem [thread:$0]  (!%p8482_p12), %s7369_s8, 512, %s342_s12, [#allocation12], %s8484_s14, %s8484_s14, %s8483_s28  }
  0x9f   : > { %p8486_p10 = scmp.ne.s32.totalorder %s8459_s23, 0  ;;  %s7038_s29 = smov [#allocation17]  }
  0xa0   : > { %s383_s25 = sshll.u32 %s7038_s29, 4  ;;  %s6762_s15 = scalar_lea.vmem %s7371_s9, 512  ;;  %s384_s25 = int_to_ptr.vmem [resolvable:$true] %s383_s25 }
  0xa1   : > { %p8487_p8 = pneg %p8486_p10  ;;  %p6763_p6 = scmp.ne.s32.totalorder %s7371_s9, %s6762_s15 }
  0xa2   : > { %p6770_p0 = scmp.lt.s32.totalorder %s7371_s9, %s7371_s9  ;;  %p6771_p1 = scmp.lt.s32.totalorder %s6762_s15, %s6762_s15 }
  0xa3   : > { %p7397_p13 = pnand %p8487_p8, %p8485_p11 }
  0xa4   : > { %p6772_p7 = por %p6771_p1, %p6770_p0 }
  0xa5   : > { %p6753_p2 = pneg %p7397_p13 }
  0xa7   : > { %p6765_p3 = pnand %p6763_p6, %p6753_p2 }
  0xa9   : > { %p6766_p12 = pneg %p6765_p3 }
  0xab   : > { %p6773_p5 = pnand %p6772_p7, %p6766_p12 }
  0xad   : > { %6776 = shalt.err (!%p6773_p5)
}
  0xae   : > { %s8489_s6 = sld [smem:[#allocation50_spill]]  ;;  %s6788_s22 = scalar_lea.vmem %s384_s25, 512 }
  0xaf   : > { %p6789_p4 = scmp.ne.s32.totalorder %s384_s25, %s6788_s22  ;;  %p6796_p8 = scmp.lt.s32.totalorder %s384_s25, %s384_s25 }
  0xb0   : > { %p6797_p6 = scmp.lt.s32.totalorder %s6788_s22, %s6788_s22 }
  0xb1   : > { %p6791_p9 = pnand %p6789_p4, %p6753_p2 }
  0xb2   : > { %p6798_p3 = por %p6797_p6, %p6796_p8 }
  0xb3   : > { %p6792_p11 = pneg %p6791_p9 }
  0xb4   : > { %6410 = dma.hbm_to_vmem [thread:$0]  (!%p7397_p13), %s8489_s6, 512, %s7371_s9, [#allocation15], %s8484_s14, %s8484_s14, %s8483_s28  }
  0xb5   : > { %p6799_p12 = pnand %p6798_p3, %p6792_p11 }
  0xb7   : > { %6802 = shalt.err (!%p6799_p12)
}
  0xb8   : > { %s8490_s5 = sld [smem:[#allocation51_spill]]  ;;  %s5886_s9 = sshll.u32 %s7336_s21, 4 }
  0xb9   : > { %s5887_s29 = sshll.u32 %s7021_s17, 1  ;;  %s5888_s15 = sshll.u32 %s7025_s18, 2 }
  0xba   : > { %s407_s8 = sadd.s32 %s5888_s15, %s5887_s29  ;;  %s401_s12 = scalar_lea.vmem [#allocation5], %s5886_s9 }
  0xbb   : > { %s410_s22 = sshll.u32 %s401_s12, 4  ;;  %s5889_s16 = sshll.u32 %s407_s8, 7  ;;  %s411_s22 = int_to_ptr.vmem [resolvable:$true] %s410_s22 }
  0xbc   : > { %s8491_s4 = sld [smem:[#allocation44_spill]]  ;;  %s5892_s2 = sshll.u32 %s7336_s21, 1 }
  0xbd   : > { %s398_s3 = scalar_lea.sflag [#allocation6], %s7336_s21  ;;  %s6816_s19 = scalar_lea.vmem %s411_s22, 256 }
  0xbe   : > { %6413 = dma.hbm_to_vmem [thread:$0]  (!%p7397_p13), %s8490_s5, 512, %s384_s25, [#allocation18], %s8484_s14, %s8484_s14, %s8483_s28  }
  0xbf   : > { %p6817_p2 = scmp.ne.s32.totalorder %s411_s22, %s6816_s19  ;;  %p8492_p0 = scmp.ne.s32.totalorder %s8479_s24, 0 }
  0xc0   : > { %s7039_s25 = smov [#allocation5]  }
  0xc1   : > { %p8493_p1 = pneg %p8492_p0  ;;  %s6821_s5 = sshll.u32 %s7039_s25, 4  ;;  %s6822_s5 = int_to_ptr.vmem [resolvable:$false] %s6821_s5 }
  0xc2   : > { %s409_s6 = scalar_lea.hbm %s8491_s4, %s5889_s16  ;;  %s6823_s29 = scalar_lea.vmem %s6822_s5, 512 }
  0xc3   : > { %p6819_p7 = pnand %p6817_p2, %p8493_p1  ;;  %p6824_p5 = scmp.lt.s32.totalorder %s411_s22, %s6822_s5 }
  0xc4   : > { %p6825_p4 = scmp.lt.s32.totalorder %s6823_s29, %s6816_s19 }
  0xc5   : > { %p6820_p13 = pneg %p6819_p7 }
  0xc6   : > { %p6826_p9 = por %p6825_p4, %p6824_p5 }
  0xc8   : > { %p6827_p11 = pnand %p6826_p9, %p6820_p13 }
  0xca   : > { %6830 = shalt.err (!%p6827_p11)
}
  0xcb   : > { %6417 = dma.hbm_to_vmem [thread:$0]  (!%p8492_p0), %s409_s6, 256, %s411_s22, %s398_s3, %s8484_s14, %s8484_s14, %s8483_s28  }
  0xcc   : > { %s8494_s1 = sshll.u32 %s7347_s7, 5  ;;  %s8495_s11 = sld [smem:[#allocation46_spill]] }
  0xcd   : > { %s443_s15 = scalar_lea.vmem [#allocation10], %s5892_s2  ;;  %p8496_p6 = pmov %p8493_p1 }
  0xce   : > { %s452_s8 = sshll.u32 %s443_s15, 4  ;;  %s7040_s12 = smov [#allocation10]   ;;  %s453_s8 = int_to_ptr.vmem [resolvable:$true] %s452_s8 }
  0xcf   : > { %s6844_s19 = scalar_lea.vmem %s453_s8, 32  ;;  %s6849_s16 = sshll.u32 %s7040_s12, 4  ;;  %s6850_s16 = int_to_ptr.vmem [resolvable:$false] %s6849_s16 }
  0xd0   : > { %p6845_p8 = scmp.ne.s32.totalorder %s453_s8, %s6844_s19  ;;  %s6851_s25 = scalar_lea.vmem %s6850_s16, 64 }
  0xd1   : > { %p6852_p2 = scmp.lt.s32.totalorder %s453_s8, %s6850_s16  ;;  %p6853_p1 = scmp.lt.s32.totalorder %s6851_s25, %s6844_s19 }
  0xd2   : > { %s450_s9 = scalar_lea.hbm %s8495_s11, %s8494_s1  ;;  %p6847_p3 = pnand %p6845_p8, %p8496_p6 }
  0xd3   : > { %p6854_p7 = por %p6853_p1, %p6852_p2 }
  0xd4   : > { %p6848_p12 = pneg %p6847_p3 }
  0xd6   : > { %p6855_p13 = pnand %p6854_p7, %p6848_p12 }
  0xd8   : > { %6858 = shalt.err (!%p6855_p13)
}
  0xd9   : > { %6423 = dma.hbm_to_vmem [thread:$0]  (!%p8492_p0), %s450_s9, 32, %s453_s8, %s7354_s30  }
  0xda   : > { %461 = sbr.rel (%p8486_p10) target bundleno = 3243 (0xcab), region = 52  ;;  %s7460_s6 = sand.u32 (!%p8486_p10), 1, %s7005_s13  }
  0xdb   : > { %s5896_s7 = sshll.u32 (!%p8486_p10), %s7460_s6, 4  ;;  %s464_s28 = scalar_lea.sflag (!%p8486_p10), [#allocation6], %s7460_s6 }
  0xdc   : > { %s7466_s14 = scalar_lea.vmem (!%p8486_p10), [#allocation5], %s5896_s7  ;;  %p8497_p5 = scmp.ne.s32.totalorder (!%p8486_p10), %s8468_s27, 0 }
  0xdf   : > { %6956 = dma.done.wait (%p8497_p5), %s464_s28, 256  }
  0xe0   : > { %6958 = vsyncadd (%p8497_p5), %s464_s28, 4294967040  ;;  %s472_s30 = sand.u32 1, %s7172_s20   ;;  %s475_s24 = scalar_lea.vmem [#allocation8], %s7460_s6 }
  0xe1   : > { %s473_s23 = scalar_lea.sflag [#allocation9], %s472_s30 }
  0xe2   : > { %6960 = dma.done.wait (%p8497_p5), %s473_s23, 48  }
  0xe3   : > { %6962 = vsyncadd (%p8497_p5), %s473_s23, 4294967248  ;;  %s8498_s22 = sld [smem:[#allocation37_spill]]  ;;  %s5897_s2 = sshll.u32 %s7460_s6, 1 }
  0xe4   : > { %s7479_s3 = scalar_lea.vmem [#allocation10], %s5897_s2 }
  0xe9   : > { %p8499_p10 = scmp.ne.s32.totalorder %s8498_s22, 0 }
  0xeb   : > { %6964 = dma.done.wait (%p8499_p10), [#allocation12], 1024  }
  0xec   : > { %6966 = vsyncadd (%p8499_p10), [#allocation12], 4294966272 }
  0xed   : > { %6968 = dma.done.wait (%p8499_p10), [#allocation15], 512  }
  0xee   : > { %6970 = vsyncadd (%p8499_p10), [#allocation15], 4294966784  ;;  %p8500_p0 = scmp.eq.s32.totalorder %s7172_s20, 0 }
  0xf0   : > { %6972 = dma.done.wait (%p8500_p0), [#allocation15], 512   ;;  %p8501_p4 = pmov %p8500_p0 }
  0xf1   : > { %p8502_p9 = pmov %p8500_p0 }
  0xf2   : > { %6974 = vsyncadd (%p8501_p4), [#allocation15], 4294966784 }
  0xf3   : > { %6976 = dma.done.wait (%p8502_p9), [#allocation18], 512   ;;  %p8503_p11 = pmov %p8500_p0 }
  0xf4   : > { %s550_s27 = sand.u32 1, %s6993_s10   ;;  %v7502_v0 = vld [vmem:[#allocation11] sm:$0xff]  ;;  %v7504_v1 = vld [vmem:[#allocation11 + $0x8] sm:$0xff]  ;;  %v7506_v2 = vld [vmem:[#allocation11 + $0x10] sm:$0xff]  ;;  %s7528_s20 = scalar_lea.vmem [#allocation19], %s5896_s7 }
  0xf5   : > { %6978 = vsyncadd (%p8503_p11), [#allocation18], 4294966784  ;;  %s7500_s5 = sshll.u32 %s550_s27, 3  ;;  %v7508_v3 = vld [vmem:[#allocation11 + $0x18] sm:$0xff]  ;;  %v7510_v4 = vld [vmem:[#allocation13] sm:$0xff]  ;;  %s8504_s1 = sld [smem:[#allocation34_spill]] }
  0xf6   : > { %v7512_v5 = vld [vmem:[#allocation13 + $0x8] sm:$0xff]  ;;  %v7514_v6 = vld [vmem:[#allocation13 + $0x10] sm:$0xff]  ;;  %v7516_v7 = vld [vmem:[#allocation13 + $0x18] sm:$0xff]  ;;  %s552_s29 = scalar_lea.vmem [#allocation20], %s7500_s5 }
  0xf7   : > { %v7518_v8 = vld [vmem:[#allocation14] sm:$0xff]  ;;  %v7520_v9 = vld [vmem:[#allocation14 + $0x8] sm:$0xff]  ;;  %v7522_v10 = vld [vmem:[#allocation14 + $0x10] sm:$0xff] }
  0xf8   : > { %v7524_v11 = vld [vmem:[#allocation14 + $0x18] sm:$0xff] }
  0xfb   : > { %p5902_p8 = scmp.ne.s32.totalorder %s8504_s1, 0 }
  0xfd   : > { %570 = sbr.rel (%p5902_p8) target bundleno = 816 (0x330), region = 88 }
 0x102   : > { %vm571_vm0 = vcmask 64512   ;;  %v7041_v12 = vmov 0.0   ;;  %vm7042_vm1 = vmmov 0   ;;  %vm900_vm2 = vcmask 7168  }
 0x103   : > { %6125 = vmatprep.subr.mxu0 %v7041_v12  ;;  %6127 = vmatprep.mubr.msk.f32.mxu0 %vm7042_vm1, %v7041_v12 }
 0x104   : > { %6126 = vmatpush3.xpose.msk.msra.mxu0 %vm571_vm0, %v7510_v4  ;;  %6130 = vmatprep.subr.mxu1 %v7041_v12 }
 0x105   : > { %6131 = vmatpush3.xpose.msk.msra.mxu1 %vm571_vm0, %v7512_v5  ;;  %6135 = vmatprep.subr.mxu0 %v7041_v12 }
 0x106   : > { %6132 = vmatprep.mubr.msk.f32.mxu1 %vm7042_vm1, %v7041_v12  ;;  %6140 = vmatprep.subr.mxu1 %v7041_v12 }
 0x107   : > { %6128 = vmatmul.mubr.msk.f32.vlgmr.msra.gmra.mxu0 %vm571_vm0, %v7502_v0 }
 0x108   : > { %6136 = vmatpush3.xpose.msk.msra.mxu0 %vm571_vm0, %v7514_v6  ;;  %6133 = vmatmul.mubr.msk.f32.vlgmr.msra.gmra.mxu1 %vm571_vm0, %v7504_v1 }
 0x109   : > { %6137 = vmatprep.mubr.msk.f32.mxu0 %vm7042_vm1, %v7041_v12  ;;  %6141 = vmatpush3.xpose.msk.msra.mxu1 %vm571_vm0, %v7516_v7 }
 0x10a   : > { %6142 = vmatprep.mubr.msk.f32.mxu1 %vm7042_vm1, %v7041_v12  ;;  %6145 = vmatprep.subr.mxu0 %v7041_v12 }
 0x10b   : > { %6138 = vmatmul.mubr.msk.f32.vlgmr.msra.gmra.mxu0 %vm571_vm0, %v7506_v2  ;;  %6150 = vmatprep.subr.mxu1 %v7041_v12 }
 0x10c   : > { %6143 = vmatmul.mubr.msk.f32.vlgmr.msra.gmra.mxu1 %vm571_vm0, %v7508_v3  ;;  %6146 = vmatpush3.msra.mxu0 %v7518_v8 }
 0x10d   : > { %6147 = vmatprep.mubr.msk.f32.mxu0 %vm7042_vm1, %v7041_v12  ;;  %6151 = vmatpush3.msra.mxu1 %v7520_v9 }
 0x10e   : > { %6155 = vmatprep.subr.mxu0 %v7041_v12  ;;  %6152 = vmatprep.mubr.msk.f32.mxu1 %vm7042_vm1, %v7041_v12 }
 0x10f   : > { %6160 = vmatprep.subr.mxu1 %v7041_v12 }
 0x1c7   : > { %v644_v13 = vpop.f32.mrf.mxu0 }
 0x1c8   : > { %v876_v14 = vsel %vm571_vm0, %v644_v13, -inf  ;;  %v720_v15 = vpop.f32.mrf.mxu1 }
 0x1c9   : > { %877 = vmax.xlane.f32.xlu0 %v876_v14  ;;  %v6129_v16 = vpop.f32.mrf.mxu0  ;;  %v879_v18 = vsel %vm571_vm0, %v720_v15, -inf }
 0x1ca   : > { %v6134_v17 = vpop.f32.mrf.mxu1 }
 0x1cb   : > { %v796_v19 = vpop.f32.mrf.mxu0 }
 0x1cc   : > { %v882_v20 = vsel %vm571_vm0, %v796_v19, -inf  ;;  %v872_v21 = vpop.f32.mrf.mxu1 }
 0x1cd   : > { %880 = vmax.xlane.f32.xlu0 %v879_v18  ;;  %883 = vmax.xlane.f32.xlu1 %v882_v20  ;;  %v6139_v22 = vpop.f32.mrf.mxu0  ;;  %v885_v24 = vsel %vm571_vm0, %v872_v21, -inf }
 0x1ce   : > { %v6144_v23 = vpop.f32.mrf.mxu1 }
 0x1d1   : > { %886 = vmax.xlane.f32.xlu1 %v885_v24 }
 0x252   : > { %v878_v25 = vpop.xlane.xlu0 %877 }
 0x253   : > { %v888_v26 = vsub.f32 %v644_v13, %v878_v25  ;;  %901 = vst.msk [vmem:[#allocation2] sm:$0xff] %vm900_vm2, %v878_v25 }
 0x255   : > { %v892_v27 = vmul.f32 1.442695, %v888_v26 }
 0x256   : > { %v881_v28 = vpop.xlane.xlu0 %880  ;;  %v884_v29 = vpop.xlane.xlu1 %883 }
 0x257   : > { %6555 = vpow2.f32 %v892_v27  ;;  %v889_v30 = vsub.f32 %v720_v15, %v881_v28  ;;  %902 = vst.msk [vmem:[#allocation2 + $0x8] sm:$0xff] %vm900_vm2, %v881_v28  ;;  %v890_v31 = vsub.f32 %v796_v19, %v884_v29  ;;  %903 = vst.msk [vmem:[#allocation2 + $0x10] sm:$0xff] %vm900_vm2, %v884_v29 }
 0x259   : > { %v894_v32 = vmul.f32 1.442695, %v889_v30  ;;  %v896_v33 = vmul.f32 1.442695, %v890_v31 }
 0x25a   : > { %v887_v34 = vpop.xlane.xlu1 %886 }
 0x25b   : > { %6557 = vpow2.f32 %v894_v32  ;;  %v891_v35 = vsub.f32 %v872_v21, %v887_v34  ;;  %904 = vst.msk [vmem:[#allocation2 + $0x18] sm:$0xff] %vm900_vm2, %v887_v34 }
 0x25c   : > { %6559 = vpow2.f32 %v896_v33 }
 0x25d   : > { %v898_v36 = vmul.f32 1.442695, %v891_v35 }
 0x25f   : > { %6561 = vpow2.f32 %v898_v36 }
 0x264   : > { %v6556_v37 = vpop.eup %6555 }
 0x265   : > { %6148 = vmatmul.mubr.msk.f32.vlgmr.msra.gmra.mxu0 %vm571_vm0, %v6556_v37  ;;  %v905_v38 = vsel %vm571_vm0, %v6556_v37, 0.0 }
 0x266   : > { %906 = vadd.xlane.f32.xlu0 %v905_v38  ;;  %6156 = vmatpush3.msra.mxu0 %v7522_v10 }
 0x267   : > { %6157 = vmatprep.mubr.msk.f32.mxu0 %vm7042_vm1, %v7041_v12 }
 0x268   : > { %v6558_v39 = vpop.eup %6557 }
 0x269   : > { %v6560_v40 = vpop.eup %6559  ;;  %6153 = vmatmul.mubr.msk.f32.vlgmr.msra.gmra.mxu1 %vm571_vm0, %v6558_v39  ;;  %v908_v41 = vsel %vm571_vm0, %v6558_v39, 0.0 }
 0x26a   : > { %6158 = vmatmul.mubr.msk.f32.vlgmr.msra.gmra.mxu0 %vm571_vm0, %v6560_v40  ;;  %6161 = vmatpush3.msra.mxu1 %v7524_v11  ;;  %v911_v42 = vsel %vm571_vm0, %v6560_v40, 0.0 }
 0x26b   : > { %909 = vadd.xlane.f32.xlu1 %v908_v41  ;;  %912 = vadd.xlane.f32.xlu0 %v911_v42 }
 0x26c   : > { %v6562_v43 = vpop.eup %6561  ;;  %6162 = vmatprep.mubr.msk.f32.mxu1 %vm7042_vm1, %v7041_v12 }
 0x26d   : > { %6163 = vmatmul.mubr.msk.f32.vlgmr.msra.gmra.mxu1 %vm571_vm0, %v6562_v43  ;;  %v914_v44 = vsel %vm571_vm0, %v6562_v43, 0.0 }
 0x26f   : > { %915 = vadd.xlane.f32.xlu1 %v914_v44 }
 0x2ef   : > { %v907_v45 = vpop.xlane.xlu0 %906 }
 0x2f0   : > { %917 = vst.msk [vmem:[#allocation3] sm:$0xff] %vm900_vm2, %v907_v45 }
 0x2f4   : > { %v913_v46 = vpop.xlane.xlu0 %912  ;;  %v910_v47 = vpop.xlane.xlu1 %909 }
 0x2f5   : > { %919 = vst.msk [vmem:[#allocation3 + $0x10] sm:$0xff] %vm900_vm2, %v913_v46  ;;  %918 = vst.msk [vmem:[#allocation3 + $0x8] sm:$0xff] %vm900_vm2, %v910_v47 }
 0x2f8   : > { %v916_v48 = vpop.xlane.xlu1 %915 }
 0x2f9   : > { %920 = vst.msk [vmem:[#allocation3 + $0x18] sm:$0xff] %vm900_vm2, %v916_v48 }
 0x325   : > { %v990_v49 = vpop.f32.mrf.mxu0 }
 0x326   : > { %1213 = vst.msk [vmem:[#allocation4] sm:$0xff] %vm571_vm0, %v990_v49 }
 0x327   : > { %v6149_v50 = vpop.f32.mrf.mxu0 }
 0x329   : > { %v1063_v51 = vpop.f32.mrf.mxu1 }
 0x32a   : > { %1214 = vst.msk [vmem:[#allocation4 + $0x8] sm:$0xff] %vm571_vm0, %v1063_v51  ;;  %v1136_v52 = vpop.f32.mrf.mxu0 }
 0x32b   : > { %1215 = vst.msk [vmem:[#allocation4 + $0x10] sm:$0xff] %vm571_vm0, %v1136_v52  ;;  %v6154_v53 = vpop.f32.mrf.mxu1 }
 0x32c   : > { %v6159_v54 = vpop.f32.mrf.mxu0 }
 0x32d   : > { %v1209_v55 = vpop.f32.mrf.mxu1 }
 0x32e   : > { %1216 = vst.msk [vmem:[#allocation4 + $0x18] sm:$0xff] %vm571_vm0, %v1209_v55 }
 0x32f   : > { %v6164_v56 = vpop.f32.mrf.mxu1 }
 0x330 PF: > { %v1222_v57 = vld [vmem:[#allocation16 + $0x18] sm:$0xff]  ;;  %v1221_v58 = vld [vmem:[#allocation16 + $0x10] sm:$0xff]  ;;  %vm1223_vm3 = vcmask 261120   ;;  %v1220_v60 = vld [vmem:[#allocation16 + $0x8] sm:$0xff]  ;;  %s7043_s4 = smov 112   ;;  %s7044_s21 = smov 120   ;;  %v1330_v15 = vlaneseq }
 0x331   : > { %6165 = vmatprep.subr.mxu0 %v1222_v57  ;;  %v1217_v59 = vld [vmem:[%s7466_s14] sm:$0xff]  ;;  %v1218_v62 = vld [vmem:[%s7466_s14 + $0x8] sm:$0xff]  ;;  %s7045_s11 = smov 104   ;;  %vm2191_vm4 = vcmask 64512   ;;  %s7046_s9 = smov 96   ;;  %vm7051_vm5 = vmmov 0  }
 0x332   : > { %6166 = vmatpush3.msra.mxu0 %v1222_v57  ;;  %6173 = vmatprep.mubr.msk.f32.mxu0 %vm1223_vm3, %v1217_v59  ;;  %v1219_v61 = vld [vmem:[#allocation16] sm:$0xff]  ;;  %v7047_v13 = vmov 1983009808   ;;  %v7625_v18 = vshrl.u32 %v1330_v15, 7  ;;  %s7049_s15 = smov 64   ;;  %s7053_s8 = smov 16  }
 0x333   : > { %6167 = vmatprep.subr.mxu0 %v1221_v58  ;;  %6176 = vmatprep.subr.msk.mxu1 %vm2191_vm4, %v7510_v4  ;;  %v1328_v14 = vunpack.c.l.s4 %v7047_v13  ;;  %s7054_s19 = smov 8   ;;  %s7055_s12 = smov 24   ;;  %vm4535_vm6 = vcmask 130048   ;;  %vm4538_vm7 = vcmask 195584   ;;  %vm5014_vm8 = vcmask 7168  }
 0x334   : > { %6168 = vmatpush3.msra.mxu0 %v1221_v58  ;;  %6177 = vmatpush3.xpose.msk.msra.mxu1 %vm2191_vm4, %v7510_v4  ;;  %s8505_s16 = sld [smem:[#allocation34_spill]] }
 0x335   : > { %6169 = vmatprep.subr.mxu0 %v1220_v60  ;;  %6181 = vmatprep.subr.msk.mxu1 %vm2191_vm4, %v7512_v5  ;;  %v1329_v4 = vunpack.c.0.s8 %v1328_v14 }
 0x336   : > { %6170 = vmatpush3.msra.mxu0 %v1220_v60 }
 0x337   : > { %6171 = vmatprep.subr.mxu0 %v1219_v61  ;;  %v7636_v22 = vsub.s32 %v1329_v4, %v7625_v18 }
 0x338   : > { %6172 = vmatpush3.msra.mxu0 %v1219_v61 }
 0x339   : > { %6174 = vmatmul.mubr.msk.f32.vlgmr.msra.gmra.mxu0 %vm1223_vm3, %v1218_v62  ;;  %6186 = vmatprep.subr.msk.mxu0 %vm2191_vm4, %v7514_v6 }
 0x33a   : > { %6187 = vmatpush3.xpose.msk.msra.mxu0 %vm2191_vm4, %v7514_v6  ;;  %v7048_v6 = vmov 1934713408   ;;  %p5997_p6 = scmp.ne.s32.totalorder %s8505_s16, 1 }
 0x33b   : > { %v1360_v19 = vunpack.c.l.s4 %v7048_v6  ;;  %s7060_s25 = smov (!%p5997_p6), 16   ;;  %s7061_s7 = smov (!%p5997_p6), 8  }
 0x33c   : > { %s7062_s28 = smov (!%p5997_p6), 24  }
 0x33d   : > { %v1361_v25 = vunpack.c.0.s8 %v1360_v19 }
 0x33f   : > { %v7659_v36 = vsub.s32 %v1361_v25, %v7625_v18 }
 0x3f9   : > { %v7604_v63 = vpop.f32.mrf.mxu0 }
 0x3fa   : > { %1315 = vrot.lane.b32.xlu1 %v7604_v63, %s7043_s4  ;;  %1309 = vrot.lane.b32.xlu0 %v7604_v63, %s7044_s21 }
 0x3fb   : > { %v1296_v12 = vpop.f32.mrf.mxu0 }
 0x3fe   : > { %1313 = vrot.lane.b32.xlu1 %v1296_v12, %s7043_s4  ;;  %1307 = vrot.lane.b32.xlu0 %v1296_v12, %s7044_s21 }
 0x402   : > { %1321 = vrot.lane.b32.xlu1 %v7604_v63, %s7045_s11  ;;  %1319 = vrot.lane.b32.xlu0 %v1296_v12, %s7045_s11 }
 0x406   : > { %1599 = vrot.lane.b32.xlu1 %v7604_v63, %s7046_s9  ;;  %1597 = vrot.lane.b32.xlu0 %v1296_v12, %s7046_s9 }
 0x46c   : > { %v7622_v16 = vpop.permute.xlu1 %1315  ;;  %v1310_v17 = vpop.permute.xlu0 %1309 }
 0x46d   : > { %1603 = vrot.lane.b32.xlu1 %v1310_v17, %s7046_s9  ;;  %v1393_v23 = vcombine.low %v7604_v63, %v7622_v16  ;;  %v1394_v24 = vcombine.high %v7604_v63, %v7622_v16 }
 0x46f   : > { %v1401_v34 = vrot.slane %v1393_v23, %v7636_v22  ;;  %v1408_v35 = vrot.slane %v1394_v24, %v7636_v22 }
 0x470   : > { %v7627_v20 = vpop.permute.xlu1 %1313  ;;  %v7629_v21 = vpop.permute.xlu0 %1307 }
 0x471   : > { %1607 = vrot.lane.b32.xlu1 %v7622_v16, %s7046_s9  ;;  %1601 = vrot.lane.b32.xlu0 %v7629_v21, %s7046_s9  ;;  %v1325_v26 = vcombine.low %v1296_v12, %v7627_v20  ;;  %v1326_v27 = vcombine.high %v1296_v12, %v7627_v20 }
 0x473   : > { %v1333_v41 = vrot.slane %v1325_v26, %v7636_v22  ;;  %v1340_v42 = vrot.slane %v1326_v27, %v7636_v22 }
 0x474   : > { %v7644_v28 = vpop.permute.xlu1 %1321  ;;  %v7646_v29 = vpop.permute.xlu0 %1319 }
 0x475   : > { %v1409_v30 = vcombine.low %v1310_v17, %v7644_v28  ;;  %v1410_v31 = vcombine.high %v1310_v17, %v7644_v28  ;;  %v1341_v32 = vcombine.low %v7629_v21, %v7646_v29  ;;  %v1342_v33 = vcombine.high %v7629_v21, %v7646_v29  ;;  %1611 = vrot.lane.b32.xlu1 %v7644_v28, %s7046_s9 }
 0x476   : > { %1605 = vrot.lane.b32.xlu0 %v7627_v20, %s7046_s9 }
 0x477   : > { %v1417_v37 = vrot.slane %v1409_v30, %v7636_v22  ;;  %v1424_v38 = vrot.slane %v1410_v31, %v7636_v22  ;;  %v1349_v39 = vrot.slane %v1341_v32, %v7636_v22  ;;  %v1356_v40 = vrot.slane %v1342_v33, %v7636_v22 }
 0x479   : > { %v1425_v43 = vcombine.low %v1401_v34, %v1417_v37  ;;  %v1426_v44 = vcombine.high %v1401_v34, %v1417_v37  ;;  %v1441_v45 = vcombine.low %v1408_v35, %v1424_v38  ;;  %v1442_v46 = vcombine.high %v1408_v35, %v1424_v38  ;;  %1893 = vrot.lane.b32.xlu1 %v1296_v12, %s7049_s15 }
 0x47a   : > { %v1357_v47 = vcombine.low %v1333_v41, %v1349_v39  ;;  %v1358_v48 = vcombine.high %v1333_v41, %v1349_v39  ;;  %v1373_v49 = vcombine.low %v1340_v42, %v1356_v40  ;;  %v1374_v50 = vcombine.high %v1340_v42, %v1356_v40  ;;  %1609 = vrot.lane.b32.xlu0 %v7646_v29, %s7046_s9 }
 0x47b   : > { %v1433_v51 = vrot.slane %v1425_v43, %v7659_v36  ;;  %v1440_v52 = vrot.slane %v1426_v44, %v7659_v36  ;;  %v1449_v53 = vrot.slane %v1441_v45, %v7659_v36  ;;  %v1456_v54 = vrot.slane %v1442_v46, %v7659_v36 }
 0x47c   : > { %v1365_v55 = vrot.slane %v1357_v47, %v7659_v36  ;;  %v1372_v56 = vrot.slane %v1358_v48, %v7659_v36  ;;  %v1381_v57 = vrot.slane %v1373_v49, %v7659_v36  ;;  %v1388_v58 = vrot.slane %v1374_v50, %v7659_v36  ;;  %v1600_v50 = vpop.permute.xlu1 %1599 }
 0x47d   : > { %v1529_v59 = vcombine.low %v1433_v51, %v1440_v52  ;;  %v5919_v60 = vcombine.high %v1433_v51, %v1440_v52  ;;  %v1545_v61 = vcombine.low %v1449_v53, %v1456_v54  ;;  %v5920_v62 = vcombine.high %v1449_v53, %v1456_v54  ;;  %1899 = vrot.lane.b32.xlu1 %v1310_v17, %s7049_s15  ;;  %v1598_v51 = vpop.permute.xlu0 %1597 }
 0x47e   : > { %1895 = vrot.lane.b32.xlu0 %v7604_v63, %s7049_s15  ;;  %v1461_v12 = vcombine.low %v1365_v55, %v1372_v56  ;;  %v5917_v13 = vcombine.high %v1365_v55, %v1372_v56  ;;  %v1477_v14 = vcombine.low %v1381_v57, %v1388_v58  ;;  %v5918_v15 = vcombine.high %v1381_v57, %v1388_v58 }
 0x47f   : > { %v1536_v4 = vrot.slane %v1529_v59, %v7636_v22  ;;  %v1544_v6 = vrot.slane %v5919_v60, %v7636_v22  ;;  %v1552_v19 = vrot.slane %v1545_v61, %v7636_v22  ;;  %v1560_v23 = vrot.slane %v5920_v62, %v7636_v22 }
 0x480   : > { %v1468_v24 = vrot.slane %v1461_v12, %v7636_v22  ;;  %v1476_v25 = vrot.slane %v5917_v13, %v7636_v22  ;;  %v1484_v17 = vrot.slane %v1477_v14, %v7636_v22  ;;  %v1492_v63 = vrot.slane %v5918_v15, %v7636_v22 }
 0x481   : > { %1903 = vrot.lane.b32.xlu1 %v7622_v16, %s7049_s15  ;;  %v1561_v26 = vcombine.low %v1536_v4, %v1544_v6  ;;  %v1562_v27 = vcombine.high %v1536_v4, %v1544_v6  ;;  %v1577_v30 = vcombine.low %v1552_v19, %v1560_v23  ;;  %v1578_v31 = vcombine.high %v1552_v19, %v1560_v23 }
 0x482   : > { %1901 = vrot.lane.b32.xlu0 %v7627_v20, %s7049_s15  ;;  %v1493_v32 = vcombine.low %v1468_v24, %v1476_v25  ;;  %v1494_v33 = vcombine.high %v1468_v24, %v1476_v25  ;;  %v1509_v34 = vcombine.low %v1484_v17, %v1492_v63  ;;  %v1510_v35 = vcombine.high %v1484_v17, %v1492_v63 }
 0x483   : > { %v1569_v37 = vrot.slane %v1561_v26, %v7659_v36  ;;  %v1585_v38 = vrot.slane %v1577_v30, %v7659_v36  ;;  %v1576_v39 = vrot.slane %v1562_v27, %v7659_v36  ;;  %v1592_v40 = vrot.slane %v1578_v31, %v7659_v36 }
 0x484   : > { %v1501_v16 = vrot.slane %v1493_v32, %v7659_v36  ;;  %v1517_v41 = vrot.slane %v1509_v34, %v7659_v36  ;;  %v1508_v42 = vrot.slane %v1494_v33, %v7659_v36  ;;  %v1524_v20 = vrot.slane %v1510_v35, %v7659_v36 }
 0x485   : > { %1897 = vrot.lane.b32.xlu1 %v7629_v21, %s7049_s15  ;;  %v7705_v43 = vcombine.low %v1569_v37, %v1585_v38  ;;  %v7707_v44 = vcombine.low %v1576_v39, %v1592_v40  ;;  %v7727_v21 = vcombine.high %v1569_v37, %v1585_v38  ;;  %v7050_v48 = vmov 0.0  }
 0x486   : > { %v7709_v45 = vcombine.low %v1501_v16, %v1517_v41  ;;  %v7711_v46 = vcombine.low %v1508_v42, %v1524_v20  ;;  %v7713_v47 = vcombine.high %v1501_v16, %v1517_v41  ;;  %6196 = vmatprep.subr.mxu0 %v7050_v48  ;;  %v7732_v49 = vcombine.high %v1508_v42, %v1524_v20 }
 0x488   : > { %6178 = vmatprep.mubr.msk.f32.mxu1 %vm2191_vm4, %v7709_v45  ;;  %6188 = vmatprep.mubr.msk.f32.mxu0 %vm2191_vm4, %v7711_v46 }
 0x489   : > { %6179 = vmatmul.mubr.msk.f32.vlgmr.msra.gmra.mxu1 %vm2191_vm4, %v7705_v43  ;;  %6189 = vmatmul.mubr.msk.f32.vlgmr.msra.gmra.mxu0 %vm2191_vm4, %v7707_v44 }
 0x48a   : > { %6182 = vmatpush3.xpose.msk.msra.mxu1 %vm2191_vm4, %v7512_v5  ;;  %6183 = vmatprep.mubr.msk.f32.mxu1 %vm2191_vm4, %v7713_v47  ;;  %v7742_v5 = vcombine.high %v1576_v39, %v1592_v40 }
 0x48b   : > { %6191 = vmatprep.subr.msk.mxu1 %vm2191_vm4, %v7516_v7  ;;  %6198 = vmatprep.mubr.msk.f32.mxu0 %vm7051_vm5, %v7050_v48 }
 0x48d   : > { %6184 = vmatmul.mubr.msk.f32.vlgmr.msra.gmra.mxu1 %vm2191_vm4, %v7727_v21 }
 0x48e   : > { %6192 = vmatpush3.xpose.msk.msra.mxu1 %vm2191_vm4, %v7516_v7  ;;  %6193 = vmatprep.mubr.msk.f32.mxu1 %vm2191_vm4, %v7732_v49 }
 0x48f   : > { %6201 = vmatprep.subr.mxu1 %v7050_v48 }
 0x491   : > { %6194 = vmatmul.mubr.msk.f32.vlgmr.msra.gmra.mxu1 %vm2191_vm4, %v7742_v5 }
 0x492   : > { %6203 = vmatprep.mubr.msk.f32.mxu1 %vm7051_vm5, %v7050_v48 }
 0x4df   : > { %v1604_v52 = vpop.permute.xlu1 %1603 }
 0x4e3   : > { %v1608_v53 = vpop.permute.xlu1 %1607  ;;  %v1602_v54 = vpop.permute.xlu0 %1601 }
 0x4e4   : > { %v1689_v55 = vcombine.low %v1600_v50, %v1608_v53  ;;  %v1690_v7 = vcombine.high %v1600_v50, %v1608_v53 }
 0x4e6   : > { %v1697_v60 = vrot.slane %v1689_v55, %v7636_v22  ;;  %v1704_v61 = vrot.slane %v1690_v7, %v7636_v22 }
 0x4e7   : > { %v1612_v56 = vpop.permute.xlu1 %1611 }
 0x4e8   : > { %v1705_v57 = vcombine.low %v1604_v52, %v1612_v56  ;;  %v1706_v58 = vcombine.high %v1604_v52, %v1612_v56  ;;  %v1606_v59 = vpop.permute.xlu0 %1605 }
 0x4e9   : > { %v1621_v13 = vcombine.low %v1598_v51, %v1606_v59  ;;  %v1622_v14 = vcombine.high %v1598_v51, %v1606_v59 }
 0x4ea   : > { %v1713_v62 = vrot.slane %v1705_v57, %v7636_v22  ;;  %v1720_v12 = vrot.slane %v1706_v58, %v7636_v22 }
 0x4eb   : > { %v1629_v30 = vrot.slane %v1621_v13, %v7636_v22  ;;  %v1636_v31 = vrot.slane %v1622_v14, %v7636_v22 }
 0x4ec   : > { %v1721_v15 = vcombine.low %v1697_v60, %v1713_v62  ;;  %v1722_v4 = vcombine.high %v1697_v60, %v1713_v62  ;;  %v1737_v6 = vcombine.low %v1704_v61, %v1720_v12  ;;  %v1738_v19 = vcombine.high %v1704_v61, %v1720_v12  ;;  %v1610_v23 = vpop.permute.xlu0 %1609 }
 0x4ed   : > { %v1637_v24 = vcombine.low %v1602_v54, %v1610_v23  ;;  %v1638_v25 = vcombine.high %v1602_v54, %v1610_v23 }
 0x4ee   : > { %v1729_v17 = vrot.slane %v1721_v15, %v7659_v36  ;;  %v1736_v63 = vrot.slane %v1722_v4, %v7659_v36  ;;  %v1745_v26 = vrot.slane %v1737_v6, %v7659_v36  ;;  %v1752_v27 = vrot.slane %v1738_v19, %v7659_v36 }
 0x4ef   : > { %v1645_v32 = vrot.slane %v1637_v24, %v7636_v22  ;;  %v1652_v33 = vrot.slane %v1638_v25, %v7636_v22 }
 0x4f0   : > { %v1825_v34 = vcombine.low %v1729_v17, %v1736_v63  ;;  %v5923_v35 = vcombine.high %v1729_v17, %v1736_v63  ;;  %v1841_v37 = vcombine.low %v1745_v26, %v1752_v27  ;;  %v5924_v38 = vcombine.high %v1745_v26, %v1752_v27 }
 0x4f1   : > { %v1653_v39 = vcombine.low %v1629_v30, %v1645_v32  ;;  %v1654_v40 = vcombine.high %v1629_v30, %v1645_v32  ;;  %v1669_v16 = vcombine.low %v1636_v31, %v1652_v33  ;;  %v1670_v41 = vcombine.high %v1636_v31, %v1652_v33 }
 0x4f2   : > { %v1832_v42 = vrot.slane %v1825_v34, %v7636_v22  ;;  %v1840_v20 = vrot.slane %v5923_v35, %v7636_v22  ;;  %v1848_v50 = vrot.slane %v1841_v37, %v7636_v22  ;;  %v1856_v51 = vrot.slane %v5924_v38, %v7636_v22 }
 0x4f3   : > { %v1661_v52 = vrot.slane %v1653_v39, %v7659_v36  ;;  %v1668_v53 = vrot.slane %v1654_v40, %v7659_v36  ;;  %v1677_v54 = vrot.slane %v1669_v16, %v7659_v36  ;;  %v1684_v55 = vrot.slane %v1670_v41, %v7659_v36 }
 0x4f4   : > { %v1857_v59 = vcombine.low %v1832_v42, %v1840_v20  ;;  %v1873_v60 = vcombine.low %v1848_v50, %v1856_v51  ;;  %v1858_v24 = vcombine.high %v1832_v42, %v1840_v20  ;;  %v1874_v25 = vcombine.high %v1848_v50, %v1856_v51 }
 0x4f5   : > { %v1757_v7 = vcombine.low %v1661_v52, %v1668_v53  ;;  %v5921_v56 = vcombine.high %v1661_v52, %v1668_v53  ;;  %v1773_v57 = vcombine.low %v1677_v54, %v1684_v55  ;;  %v5922_v58 = vcombine.high %v1677_v54, %v1684_v55 }
 0x4f6   : > { %v1865_v4 = vrot.slane %v1857_v59, %v7659_v36  ;;  %v1881_v6 = vrot.slane %v1873_v60, %v7659_v36  ;;  %v1872_v31 = vrot.slane %v1858_v24, %v7659_v36  ;;  %v1888_v32 = vrot.slane %v1874_v25, %v7659_v36 }
 0x4f7   : > { %v1764_v61 = vrot.slane %v1757_v7, %v7636_v22  ;;  %v1772_v62 = vrot.slane %v5921_v56, %v7636_v22  ;;  %v1780_v12 = vrot.slane %v1773_v57, %v7636_v22  ;;  %v1788_v13 = vrot.slane %v5922_v58, %v7636_v22  ;;  %v5957_v56 = vld.sshfl [vmem:[%s7479_s3] sm:$0x11 pattern:$0x75316420] }
 0x4f8   : > { %v7777_v17 = vcombine.low %v1865_v4, %v1881_v6  ;;  %v7786_v30 = vcombine.high %v1865_v4, %v1881_v6  ;;  %v7824_v37 = vcombine.high %v1872_v31, %v1888_v32  ;;  %v7052_v54 = vmov 1966171168  }
 0x4f9   : > { %v1789_v14 = vcombine.low %v1764_v61, %v1772_v62  ;;  %v1805_v15 = vcombine.low %v1780_v12, %v1788_v13  ;;  %v1790_v26 = vcombine.high %v1764_v61, %v1772_v62  ;;  %v1806_v27 = vcombine.high %v1780_v12, %v1788_v13 }
 0x4fa   : > { %6202 = vmatpush3.xpose.msk.msra.mxu1 %vm2191_vm4, %v7777_v17  ;;  %v3122_v55 = vunpack.c.l.s4 %v7052_v54  ;;  %v3120_v57 = vcombine.high %v5957_v56, %v5957_v56  ;;  %v3137_v60 = vsub.s32 0, %v7625_v18 }
 0x4fb   : > { %v1797_v19 = vrot.slane %v1789_v14, %v7659_v36  ;;  %v1813_v23 = vrot.slane %v1805_v15, %v7659_v36  ;;  %6211 = vmatprep.subr.mxu1 %v7050_v48  ;;  %v1804_v34 = vrot.slane %v1790_v26, %v7659_v36  ;;  %v1820_v35 = vrot.slane %v1806_v27, %v7659_v36 }
 0x4fc   : > { %v3123_v7 = vunpack.c.0.s8 %v3122_v55 }
 0x4fd   : > { %v7779_v63 = vcombine.low %v1797_v19, %v1813_v23  ;;  %6204 = vmatmul.mubr.msk.f32.vlgmr.msra.gmra.mxu1 %vm2191_vm4, %v7705_v43  ;;  %v7797_v33 = vcombine.high %v1797_v19, %v1813_v23  ;;  %v7806_v43 = vcombine.low %v1872_v31, %v1888_v32 }
 0x4fe   : > { %6212 = vmatpush3.xpose.msk.msra.mxu1 %vm2191_vm4, %v7786_v30  ;;  %6213 = vmatprep.mubr.msk.f32.mxu1 %vm7051_vm5, %v7050_v48  ;;  %v3126_v58 = vsub.s32 %v3123_v7, %v7625_v18 }
 0x4ff   : > { %6197 = vmatpush3.xpose.msk.msra.mxu0 %vm2191_vm4, %v7779_v63  ;;  %6221 = vmatprep.subr.mxu1 %v7050_v48 }
 0x500   : > { %6206 = vmatprep.subr.mxu0 %v7050_v48  ;;  %v3134_v59 = vrot.slane %v3120_v57, %v3126_v58  ;;  %v3127_v61 = vrot.slane %v5957_v56, %v3126_v58 }
 0x501   : > { %6214 = vmatmul.mubr.msk.f32.vlgmr.msra.gmra.mxu1 %vm2191_vm4, %v7727_v21 }
 0x502   : > { %6199 = vmatmul.mubr.msk.f32.vlgmr.msra.gmra.mxu0 %vm2191_vm4, %v7709_v45  ;;  %6222 = vmatpush3.xpose.msk.msra.mxu1 %vm2191_vm4, %v7806_v43  ;;  %v7817_v45 = vcombine.low %v1804_v34, %v1820_v35  ;;  %v3142_v62 = vrot.slane %v3134_v59, %v3137_v60  ;;  %v3138_v12 = vrot.slane %v3127_v61, %v3137_v60  ;;  %v7924_v61 = vpop.permute.xlu1 %1893 }
 0x503   : > { %6207 = vmatpush3.xpose.msk.msra.mxu0 %vm2191_vm4, %v7797_v33  ;;  %6208 = vmatprep.mubr.msk.f32.mxu0 %vm7051_vm5, %v7050_v48 }
 0x504   : > { %6216 = vmatprep.subr.mxu0 %v7050_v48  ;;  %6223 = vmatprep.mubr.msk.f32.mxu1 %vm7051_vm5, %v7050_v48 }
 0x505   : > { %6231 = vmatprep.subr.mxu1 %v7050_v48  ;;  %6224 = vmatmul.mubr.msk.f32.vlgmr.msra.gmra.mxu1 %vm2191_vm4, %v7707_v44 }
 0x506   : > { %6209 = vmatmul.mubr.msk.f32.vlgmr.msra.gmra.mxu0 %vm2191_vm4, %v7713_v47  ;;  %6232 = vmatpush3.xpose.msk.msra.mxu1 %vm2191_vm4, %v7824_v37  ;;  %v7835_v47 = vcombine.high %v1804_v34, %v1820_v35 }
 0x507   : > { %6217 = vmatpush3.xpose.msk.msra.mxu0 %vm2191_vm4, %v7817_v45  ;;  %6218 = vmatprep.mubr.msk.f32.mxu0 %vm7051_vm5, %v7050_v48 }
 0x508   : > { %6226 = vmatprep.subr.mxu0 %v7050_v48  ;;  %6233 = vmatprep.mubr.msk.f32.mxu1 %vm7051_vm5, %v7050_v48 }
 0x509   : > { %6241 = vmatprep.subr.mxu1 %v7050_v48  ;;  %6234 = vmatmul.mubr.msk.f32.vlgmr.msra.gmra.mxu1 %vm2191_vm4, %v7742_v5 }
 0x50a   : > { %6219 = vmatmul.mubr.msk.f32.vlgmr.msra.gmra.mxu0 %vm2191_vm4, %v7711_v46  ;;  %6243 = vmatprep.mubr.msk.f32.mxu1 %vm7051_vm5, %v7050_v48 }
 0x50b   : > { %6227 = vmatpush3.xpose.msk.msra.mxu0 %vm2191_vm4, %v7835_v47  ;;  %6228 = vmatprep.mubr.msk.f32.mxu0 %vm7051_vm5, %v7050_v48 }
 0x50c   : > { %6236 = vmatprep.subr.mxu0 %v7050_v48 }
 0x50e   : > { %6229 = vmatmul.mubr.msk.f32.vlgmr.msra.gmra.mxu0 %vm2191_vm4, %v7732_v49 }
 0x50f   : > { %6238 = vmatprep.mubr.msk.f32.mxu0 %vm7051_vm5, %v7050_v48 }
 0x549   : > { %v7853_v44 = vpop.f32.mrf.mxu1  ;;  %v7855_v46 = vpop.f32.mrf.mxu0 }
 0x54a   : > { %v3156_v21 = vsel %vm2191_vm4, %v7853_v44, -inf  ;;  %v3168_v5 = vsel %vm2191_vm4, %v7855_v46, -inf }
 0x54b   : > { %v7861_v38 = vpop.f32.mrf.mxu0  ;;  %3157 = vmax.xlane.f32.xlu1 %v3156_v21  ;;  %v7863_v39 = vpop.f32.mrf.mxu1  ;;  %3169 = vmax.xlane.f32.xlu0 %v3168_v5 }
 0x54c   : > { %v3165_v40 = vsel %vm2191_vm4, %v7861_v38, -inf  ;;  %v3153_v16 = vsel %vm2191_vm4, %v7863_v39, -inf }
 0x54d   : > { %v7865_v49 = vpop.f32.mrf.mxu1 }
 0x54e   : > { %v3162_v50 = vsel %vm2191_vm4, %v7865_v49, -inf }
 0x54f   : > { %3166 = vmax.xlane.f32.xlu1 %v3165_v40  ;;  %v7871_v41 = vpop.f32.mrf.mxu1  ;;  %3154 = vmax.xlane.f32.xlu0 %v3153_v16 }
 0x550   : > { %v3159_v20 = vsel %vm2191_vm4, %v7871_v41, -inf }
 0x551   : > { %v7873_v42 = vpop.f32.mrf.mxu1 }
 0x552   : > { %v3174_v53 = vsel %vm2191_vm4, %v7873_v42, -inf }
 0x553   : > { %3160 = vmax.xlane.f32.xlu1 %v3159_v20  ;;  %v7879_v51 = vpop.f32.mrf.mxu1  ;;  %3163 = vmax.xlane.f32.xlu0 %v3162_v50 }
 0x554   : > { %v3171_v52 = vsel %vm2191_vm4, %v7879_v51, -inf }
 0x557   : > { %3172 = vmax.xlane.f32.xlu1 %v3171_v52  ;;  %3175 = vmax.xlane.f32.xlu0 %v3174_v53 }
 0x5bd   : > { %v2670_v13 = vpop.f32.mrf.mxu1 }
 0x5be   : > { %v7888_v14 = vadd.f32 %v3142_v62, %v2670_v13 }
 0x5bf   : > { %v6205_v15 = vpop.f32.mrf.mxu1 }
 0x5c0   : > { %v3180_v6 = vsel %vm2191_vm4, %v7888_v14, -inf }
 0x5c1   : > { %v2816_v23 = vpop.f32.mrf.mxu1  ;;  %3181 = vmax.xlane.f32.xlu0 %v3180_v6 }
 0x5c2   : > { %v2597_v4 = vpop.f32.mrf.mxu0  ;;  %v7896_v27 = vadd.f32 %v3142_v62, %v2816_v23 }
 0x5c3   : > { %v7892_v19 = vadd.f32 %v3138_v12, %v2597_v4  ;;  %v6215_v18 = vpop.f32.mrf.mxu1 }
 0x5c4   : > { %v6200_v24 = vpop.f32.mrf.mxu0  ;;  %v3186_v16 = vsel %vm2191_vm4, %v7896_v27, -inf }
 0x5c5   : > { %v3177_v25 = vsel %vm2191_vm4, %v7892_v19, -inf  ;;  %v2962_v32 = vpop.f32.mrf.mxu1 }
 0x5c6   : > { %v2743_v26 = vpop.f32.mrf.mxu0  ;;  %3178 = vmax.xlane.f32.xlu0 %v3177_v25  ;;  %v7902_v40 = vadd.f32 %v3142_v62, %v2962_v32 }
 0x5c7   : > { %v7898_v31 = vadd.f32 %v3138_v12, %v2743_v26  ;;  %v6225_v21 = vpop.f32.mrf.mxu1 }
 0x5c8   : > { %v6210_v34 = vpop.f32.mrf.mxu0  ;;  %v3192_v56 = vsel %vm2191_vm4, %v7902_v40, -inf }
 0x5c9   : > { %v3183_v35 = vsel %vm2191_vm4, %v7898_v31, -inf  ;;  %v3108_v50 = vpop.f32.mrf.mxu1 }
 0x5ca   : > { %3184 = vmax.xlane.f32.xlu1 %v3183_v35  ;;  %v2889_v5 = vpop.f32.mrf.mxu0  ;;  %3187 = vmax.xlane.f32.xlu0 %v3186_v16  ;;  %v7910_v7 = vadd.f32 %v3142_v62, %v3108_v50  ;;  %v7926_v62 = vpop.permute.xlu1 %1899 }
 0x5cb   : > { %v7906_v20 = vadd.f32 %v3138_v12, %v2889_v5  ;;  %v6235_v54 = vpop.f32.mrf.mxu1 }
 0x5cc   : > { %v6220_v52 = vpop.f32.mrf.mxu0  ;;  %v3198_v60 = vsel %vm2191_vm4, %v7910_v7, -inf }
 0x5cd   : > { %v3189_v53 = vsel %vm2191_vm4, %v7906_v20, -inf }
 0x5ce   : > { %3190 = vmax.xlane.f32.xlu1 %v3189_v53  ;;  %v3035_v55 = vpop.f32.mrf.mxu0  ;;  %3193 = vmax.xlane.f32.xlu0 %v3192_v56  ;;  %v1904_v13 = vpop.permute.xlu1 %1903 }
 0x5cf   : > { %v7914_v57 = vadd.f32 %v3138_v12, %v3035_v55  ;;  %v1896_v12 = vpop.permute.xlu0 %1895 }
 0x5d0   : > { %v6230_v58 = vpop.f32.mrf.mxu0 }
 0x5d1   : > { %v3195_v59 = vsel %vm2191_vm4, %v7914_v57, -inf }
 0x5d2   : > { %3196 = vmax.xlane.f32.xlu1 %v3195_v59  ;;  %3199 = vmax.xlane.f32.xlu0 %v3198_v60  ;;  %v7930_v6 = vpop.permute.xlu1 %1897 }
 0x5d3   : > { %v7928_v15 = vpop.permute.xlu0 %1901 }
 0x5d6   : > { %v3158_v23 = vpop.xlane.xlu1 %3157 }
 0x5d7   : > { %v3170_v4 = vpop.xlane.xlu0 %3169 }
 0x5da   : > { %v3167_v25 = vpop.xlane.xlu1 %3166 }
 0x5db   : > { %v3155_v24 = vpop.xlane.xlu0 %3154 }
 0x5de   : > { %v3161_v26 = vpop.xlane.xlu1 %3160 }
 0x5df   : > { %v3164_v18 = vpop.xlane.xlu0 %3163 }
 0x5e3   : > { %1907 = vrot.lane.b32.xlu1 %v7644_v28, %s7049_s15  ;;  %v3176_v28 = vpop.xlane.xlu0 %3175 }
 0x5e8   : > { %1905 = vrot.lane.b32.xlu0 %v7646_v29, %s7049_s15  ;;  %v3173_v29 = vpop.xlane.xlu1 %3172 }
 0x64a   : > { %v3182_v32 = vpop.xlane.xlu0 %3181 }
 0x64b   : > { %v3202_v34 = vmax.f32 %v3158_v23, %v3182_v32 }
 0x64d   : > { %v3234_v35 = vsub.f32 %v7853_v44, %v3202_v34  ;;  %v3210_v50 = vsub.f32 %v7888_v14, %v3202_v34 }
 0x64f   : > { %v3179_v21 = vpop.xlane.xlu0 %3178  ;;  %v3243_v5 = vmul.f32 1.442695, %v3234_v35  ;;  %v3219_v58 = vmul.f32 1.442695, %v3210_v50  ;;  %v1917_v50 = vcombine.low %v7924_v61, %v7928_v15 }
 0x650   : > { %v3201_v16 = vmax.f32 %v3155_v24, %v3179_v21 }
 0x651   : > { %6565 = vpow2.f32 %v3243_v5  ;;  %v1986_v5 = vcombine.high %v1896_v12, %v1904_v13 }
 0x652   : > { %v3233_v53 = vsub.f32 %v7863_v39, %v3201_v16  ;;  %v3209_v55 = vsub.f32 %v7892_v19, %v3201_v16  ;;  %6567 = vpow2.f32 %v3219_v58 }
 0x653   : > { %v3185_v52 = vpop.xlane.xlu1 %3184  ;;  %v3188_v56 = vpop.xlane.xlu0 %3187 }
 0x654   : > { %v3203_v54 = vmax.f32 %v3161_v26, %v3185_v52  ;;  %v3204_v60 = vmax.f32 %v3164_v18, %v3188_v56  ;;  %v3241_v32 = vmul.f32 1.442695, %v3233_v53  ;;  %v3217_v24 = vmul.f32 1.442695, %v3209_v55 }
 0x655   : > { %v1985_v26 = vcombine.low %v1896_v12, %v1904_v13 }
 0x656   : > { %v3211_v59 = vsub.f32 %v7898_v31, %v3203_v54  ;;  %v3235_v44 = vsub.f32 %v7871_v41, %v3203_v54  ;;  %v3212_v14 = vsub.f32 %v7896_v27, %v3204_v60  ;;  %v3236_v34 = vsub.f32 %v7865_v49, %v3204_v60 }
 0x657   : > { %v3191_v23 = vpop.xlane.xlu1 %3190  ;;  %v3194_v39 = vpop.xlane.xlu0 %3193  ;;  %6569 = vpow2.f32 %v3241_v32  ;;  %v1918_v49 = vcombine.high %v7924_v61, %v7928_v15  ;;  %v1993_v53 = vrot.slane %v1985_v26, %v7636_v22  ;;  %v2000_v54 = vrot.slane %v1986_v5, %v7636_v22 }
 0x658   : > { %v3205_v35 = vmax.f32 %v3167_v25, %v3191_v23  ;;  %v3206_v19 = vmax.f32 %v3170_v4, %v3194_v39  ;;  %v3221_v16 = vmul.f32 1.442695, %v3211_v59  ;;  %v3247_v31 = vmul.f32 1.442695, %v3236_v34 }
 0x659   : > { %v3245_v41 = vmul.f32 1.442695, %v3235_v44  ;;  %6571 = vpow2.f32 %v3217_v24  ;;  %v3223_v27 = vmul.f32 1.442695, %v3212_v14  ;;  %v1925_v61 = vrot.slane %v1917_v50, %v7636_v22 }
 0x65a   : > { %v3213_v21 = vsub.f32 %v7906_v20, %v3205_v35  ;;  %v3237_v25 = vsub.f32 %v7861_v38, %v3205_v35  ;;  %v3238_v20 = vsub.f32 %v7855_v46, %v3206_v19  ;;  %6573 = vpow2.f32 %v3247_v31 }
 0x65b   : > { %v3197_v18 = vpop.xlane.xlu1 %3196  ;;  %v3200_v4 = vpop.xlane.xlu0 %3199  ;;  %v3214_v13 = vsub.f32 %v7902_v40, %v3206_v19  ;;  %6575 = vpow2.f32 %v3221_v16  ;;  %v1932_v56 = vrot.slane %v1918_v49, %v7636_v22 }
 0x65c   : > { %v3225_v12 = vmul.f32 1.442695, %v3213_v21  ;;  %v7948_v52 = vmax.f32 %v3176_v28, %v3200_v4  ;;  %v7952_v38 = vmax.f32 %v3173_v29, %v3197_v18  ;;  %6577 = vpow2.f32 %v3245_v41 }
 0x65d   : > { %v3249_v15 = vmul.f32 1.442695, %v3237_v25  ;;  %6579 = vpow2.f32 %v3223_v27  ;;  %v3251_v40 = vmul.f32 1.442695, %v3238_v20  ;;  %v3227_v60 = vmul.f32 1.442695, %v3214_v13 }
 0x65e   : > { %v7958_v59 = vpop.eup %6565  ;;  %6581 = vpow2.f32 %v3225_v12  ;;  %v3240_v29 = vsub.f32 %v7873_v42, %v7948_v52  ;;  %v3239_v32 = vsub.f32 %v7879_v51, %v7952_v38 }
 0x65f   : > { %v1908_v55 = vpop.permute.xlu1 %1907  ;;  %v1906_v58 = vpop.permute.xlu0 %1905  ;;  %6583 = vpow2.f32 %v3249_v15  ;;  %v3260_v34 = vsel %vm2191_vm4, %v7958_v59, 0.0 }
 0x660   : > { %v2001_v46 = vcombine.low %v7926_v62, %v1908_v55  ;;  %v2002_v28 = vcombine.high %v7926_v62, %v1908_v55  ;;  %v1933_v35 = vcombine.low %v7930_v6, %v1906_v58  ;;  %v1934_v24 = vcombine.high %v7930_v6, %v1906_v58  ;;  %3261 = vadd.xlane.f32.xlu1 %v3260_v34  ;;  %v7976_v50 = vpop.eup %6567 }
 0x661   : > { %6585 = vpow2.f32 %v3251_v40  ;;  %v3255_v21 = vmul.f32 1.442695, %v3240_v29  ;;  %v3215_v34 = vsub.f32 %v7914_v57, %v7952_v38 }
 0x662   : > { %v2009_v23 = vrot.slane %v2001_v46, %v7636_v22  ;;  %v2016_v44 = vrot.slane %v2002_v28, %v7636_v22  ;;  %v1941_v26 = vrot.slane %v1933_v35, %v7636_v22  ;;  %v1948_v5 = vrot.slane %v1934_v24, %v7636_v22 }
 0x663   : > { %v3284_v24 = vsel %vm2191_vm4, %v7976_v50, 0.0  ;;  %6587 = vpow2.f32 %v3227_v60  ;;  %v3216_v60 = vsub.f32 %v7910_v7, %v7948_v52 }
 0x664   : > { %v2017_v62 = vcombine.low %v1993_v53, %v2009_v23  ;;  %v2018_v14 = vcombine.high %v1993_v53, %v2009_v23  ;;  %v2033_v39 = vcombine.low %v2000_v54, %v2016_v44  ;;  %v2034_v42 = vcombine.high %v2000_v54, %v2016_v44  ;;  %v7978_v20 = vpop.eup %6569  ;;  %3285 = vadd.xlane.f32.xlu1 %v3284_v24 }
 0x665   : > { %v1949_v31 = vcombine.low %v1925_v61, %v1941_v26  ;;  %v1950_v18 = vcombine.high %v1925_v61, %v1941_v26  ;;  %v1965_v49 = vcombine.low %v1932_v56, %v1948_v5  ;;  %v1966_v27 = vcombine.high %v1932_v56, %v1948_v5 }
 0x666   : > { %v2025_v51 = vrot.slane %v2017_v62, %v7659_v36  ;;  %v2032_v19 = vrot.slane %v2018_v14, %v7659_v36  ;;  %v2041_v6 = vrot.slane %v2033_v39, %v7659_v36  ;;  %v2048_v16 = vrot.slane %v2034_v42, %v7659_v36  ;;  %v6572_v54 = vpop.eup %6571 }
 0x667   : > { %v1957_v13 = vrot.slane %v1949_v31, %v7659_v36  ;;  %v1964_v53 = vrot.slane %v1950_v18, %v7659_v36  ;;  %v1973_v15 = vrot.slane %v1965_v49, %v7659_v36  ;;  %v1980_v46 = vrot.slane %v1966_v27, %v7659_v36  ;;  %v7990_v56 = vpop.eup %6573 }
 0x668   : > { %v2121_v41 = vcombine.low %v2025_v51, %v2032_v19  ;;  %v5927_v25 = vcombine.high %v2025_v51, %v2032_v19  ;;  %v2137_v4 = vcombine.low %v2041_v6, %v2048_v16  ;;  %v5928_v12 = vcombine.high %v2041_v6, %v2048_v16  ;;  %v7998_v23 = vpop.eup %6575 }
 0x669   : > { %v2053_v58 = vcombine.low %v1957_v13, %v1964_v53  ;;  %v5925_v29 = vcombine.high %v1957_v13, %v1964_v53  ;;  %v2069_v44 = vcombine.low %v1973_v15, %v1980_v46  ;;  %v5926_v35 = vcombine.high %v1973_v15, %v1980_v46  ;;  %v8004_v14 = vpop.eup %6577 }
 0x66a   : > { %v7983_v55 = vrot.slane %v2121_v41, %v7636_v22  ;;  %v7986_v61 = vrot.slane %v5927_v25, %v7636_v22  ;;  %v7993_v40 = vrot.slane %v2137_v4, %v7636_v22  ;;  %v7996_v28 = vrot.slane %v5928_v12, %v7636_v22  ;;  %v8010_v26 = vpop.eup %6579 }
 0x66b   : > { %v3257_v62 = vsel %vm2191_vm4, %v7978_v20, 0.0  ;;  %v2060_v39 = vrot.slane %v2053_v58, %v7636_v22  ;;  %v2068_v42 = vrot.slane %v5925_v29, %v7636_v22  ;;  %v2076_v51 = vrot.slane %v2069_v44, %v7636_v22  ;;  %v8016_v6 = vpop.eup %6581 }
 0x66c   : > { %3258 = vadd.xlane.f32.xlu0 %v3257_v62  ;;  %v2084_v19 = vrot.slane %v5926_v35, %v7636_v22  ;;  %v3266_v5 = vsel %vm2191_vm4, %v7990_v56, 0.0  ;;  %v3253_v16 = vmul.f32 1.442695, %v3239_v32  ;;  %v2153_v38 = vcombine.low %v7983_v55, %v7986_v61  ;;  %v8025_v25 = vpop.eup %6583 }
 0x66d   : > { %v2085_v57 = vcombine.low %v2060_v39, %v2068_v42  ;;  %v2169_v31 = vcombine.low %v7993_v40, %v7996_v28  ;;  %6589 = vpow2.f32 %v3255_v21  ;;  %v3281_v18 = vsel %vm2191_vm4, %v6572_v54, 0.0 }
 0x66e   : > { %v2101_v41 = vcombine.low %v2076_v51, %v2084_v19  ;;  %3282 = vadd.xlane.f32.xlu1 %v3281_v18  ;;  %v2161_v49 = vrot.slane %v2153_v38, %v7659_v36  ;;  %v8030_v4 = vpop.eup %6585  ;;  %v3229_v13 = vmul.f32 1.442695, %v3215_v34  ;;  %6591 = vpow2.f32 %v3253_v16 }
 0x66f   : > { %v2093_v32 = vrot.slane %v2085_v57, %v7659_v36  ;;  %v2177_v27 = vrot.slane %v2169_v31, %v7659_v36  ;;  %v3263_v52 = vsel %vm2191_vm4, %v8004_v14, 0.0  ;;  %v3290_v21 = vsel %vm2191_vm4, %v8010_v26, 0.0 }
 0x670   : > { %3267 = vadd.xlane.f32.xlu0 %v3266_v5  ;;  %v2109_v12 = vrot.slane %v2101_v41, %v7659_v36  ;;  %v2086_v15 = vcombine.high %v2060_v39, %v2068_v42  ;;  %v3231_v46 = vmul.f32 1.442695, %v3216_v60  ;;  %v2102_v58 = vcombine.high %v2076_v51, %v2084_v19  ;;  %v6588_v62 = vpop.eup %6587 }
 0x671   : > { %v8033_v7 = vcombine.low %v2161_v49, %v2177_v27  ;;  %v2154_v29 = vcombine.high %v7983_v55, %v7986_v61  ;;  %v2170_v44 = vcombine.high %v7993_v40, %v7996_v28  ;;  %6593 = vpow2.f32 %v3229_v13 }
 0x672   : > { %v8039_v53 = vcombine.low %v2093_v32, %v2109_v12  ;;  %3264 = vadd.xlane.f32.xlu1 %v3263_v52  ;;  %v3287_v35 = vsel %vm2191_vm4, %v7998_v23, 0.0  ;;  %v3272_v24 = vsel %vm2191_vm4, %v8030_v4, 0.0  ;;  %v8056_v55 = vcombine.high %v2093_v32, %v2109_v12 }
 0x673   : > { %6242 = vmatpush3.msra.mxu1 %v8033_v7  ;;  %v8058_v61 = vcombine.high %v2161_v49, %v2177_v27  ;;  %v2100_v40 = vrot.slane %v2086_v15, %v7659_v36  ;;  %6595 = vpow2.f32 %v3231_v46  ;;  %v2184_v28 = vrot.slane %v2170_v44, %v7659_v36 }
 0x674   : > { %3291 = vadd.xlane.f32.xlu0 %v3290_v21  ;;  %6237 = vmatpush3.msra.mxu0 %v8039_v53  ;;  %v3269_v34 = vsel %vm2191_vm4, %v8025_v25, 0.0  ;;  %v3293_v39 = vsel %vm2191_vm4, %v8016_v6, 0.0  ;;  %v3296_v16 = vsel %vm2191_vm4, %v6588_v62, 0.0 }
 0x675   : > { %6239 = vmatmul.mubr.msk.f32.vlgmr.msra.gmra.mxu0 %vm2191_vm4, %v6572_v54  ;;  %6244 = vmatmul.mubr.msk.f32.vlgmr.msra.gmra.mxu1 %vm2191_vm4, %v7976_v50  ;;  %v2116_v54 = vrot.slane %v2102_v58, %v7659_v36  ;;  %v2168_v50 = vrot.slane %v2154_v29, %v7659_v36 }
 0x676   : > { %6246 = vmatprep.subr.mxu0 %v7050_v48  ;;  %6251 = vmatprep.subr.mxu1 %v7050_v48 }
 0x677   : > { %3273 = vadd.xlane.f32.xlu1 %v3272_v24  ;;  %6247 = vmatpush3.msra.mxu0 %v8056_v55  ;;  %v8076_v51 = vcombine.low %v2100_v40, %v2116_v54  ;;  %v8078_v19 = vcombine.low %v2168_v50, %v2184_v28 }
 0x678   : > { %3288 = vadd.xlane.f32.xlu0 %v3287_v35  ;;  %6252 = vmatpush3.msra.mxu1 %v8058_v61 }
 0x679   : > { %6248 = vmatprep.mubr.msk.f32.mxu0 %vm7051_vm5, %v7050_v48  ;;  %6253 = vmatprep.mubr.msk.f32.mxu1 %vm7051_vm5, %v7050_v48 }
 0x67a   : > { %6256 = vmatprep.subr.mxu0 %v7050_v48  ;;  %6261 = vmatprep.subr.mxu1 %v7050_v48  ;;  %v6590_v42 = vpop.eup %6589 }
 0x67b   : > { %3294 = vadd.xlane.f32.xlu1 %v3293_v39  ;;  %6249 = vmatmul.mubr.msk.f32.vlgmr.msra.gmra.mxu0 %vm2191_vm4, %v7998_v23  ;;  %v6592_v5 = vpop.eup %6591  ;;  %v3278_v57 = vsel %vm2191_vm4, %v6590_v42, 0.0  ;;  %v8094_v23 = vcombine.high %v2100_v40, %v2116_v54 }
 0x67c   : > { %3270 = vadd.xlane.f32.xlu0 %v3269_v34  ;;  %6254 = vmatmul.mubr.msk.f32.vlgmr.msra.gmra.mxu1 %vm2191_vm4, %v8010_v26  ;;  %v8096_v26 = vcombine.high %v2168_v50, %v2184_v28  ;;  %v3275_v31 = vsel %vm2191_vm4, %v6592_v5, 0.0 }
 0x67d   : > { %6257 = vmatpush3.msra.mxu0 %v8076_v51  ;;  %6262 = vmatpush3.msra.mxu1 %v8078_v19 }
 0x67e   : > { %6258 = vmatprep.mubr.msk.f32.mxu0 %vm7051_vm5, %v7050_v48  ;;  %6263 = vmatprep.mubr.msk.f32.mxu1 %vm7051_vm5, %v7050_v48  ;;  %v6594_v38 = vpop.eup %6593 }
 0x67f   : > { %3297 = vadd.xlane.f32.xlu1 %v3296_v16  ;;  %6266 = vmatprep.subr.mxu0 %v7050_v48 }
 0x680   : > { %3279 = vadd.xlane.f32.xlu0 %v3278_v57  ;;  %6271 = vmatprep.subr.mxu1 %v7050_v48  ;;  %v6596_v60 = vpop.eup %6595 }
 0x681   : > { %6259 = vmatmul.mubr.msk.f32.vlgmr.msra.gmra.mxu0 %vm2191_vm4, %v8016_v6  ;;  %6264 = vmatmul.mubr.msk.f32.vlgmr.msra.gmra.mxu1 %vm2191_vm4, %v6588_v62  ;;  %v3299_v6 = vsel %vm2191_vm4, %v6594_v38, 0.0 }
 0x682   : > { %6267 = vmatpush3.msra.mxu0 %v8094_v23  ;;  %6272 = vmatpush3.msra.mxu1 %v8096_v26 }
 0x683   : > { %6268 = vmatprep.mubr.msk.f32.mxu0 %vm7051_vm5, %v7050_v48  ;;  %6273 = vmatprep.mubr.msk.f32.mxu1 %vm7051_vm5, %v7050_v48 }
 0x684   : > { %3276 = vadd.xlane.f32.xlu0 %v3275_v31  ;;  %6281 = vmatprep.subr.mxu1 %v7520_v9 }
 0x685   : > { %6269 = vmatmul.mubr.msk.f32.vlgmr.msra.gmra.mxu0 %vm2191_vm4, %v6594_v38  ;;  %6274 = vmatmul.mubr.msk.f32.vlgmr.msra.gmra.mxu1 %vm2191_vm4, %v6596_v60 }
 0x686   : > { %6278 = vmatprep.mubr.msk.f32.mxu0 %vm2191_vm4, %v7978_v20  ;;  %6283 = vmatprep.mubr.msk.f32.mxu1 %vm2191_vm4, %v8004_v14  ;;  %v3302_v20 = vsel %vm2191_vm4, %v6596_v60, 0.0 }
 0x687   : > { %6276 = vmatprep.subr.mxu0 %v7518_v8  ;;  %6282 = vmatpush3.msra.mxu1 %v7520_v9 }
 0x688   : > { %3300 = vadd.xlane.f32.xlu0 %v3299_v6  ;;  %6277 = vmatpush3.msra.mxu0 %v7518_v8 }
 0x689   : > { %6279 = vmatmul.mubr.msk.f32.vlgmr.msra.gmra.mxu0 %vm2191_vm4, %v7958_v59  ;;  %6284 = vmatmul.mubr.msk.f32.vlgmr.msra.gmra.mxu1 %vm2191_vm4, %v7990_v56 }
 0x68a   : > { %6288 = vmatprep.mubr.msk.f32.mxu0 %vm2191_vm4, %v8025_v25  ;;  %6291 = vmatprep.subr.mxu1 %v7524_v11 }
 0x68b   : > { %6293 = vmatprep.mubr.msk.f32.mxu1 %vm2191_vm4, %v6592_v5  ;;  %6292 = vmatpush3.msra.mxu1 %v7524_v11 }
 0x68c   : > { %3303 = vadd.xlane.f32.xlu0 %v3302_v20  ;;  %6286 = vmatprep.subr.mxu0 %v7522_v10 }
 0x68d   : > { %6287 = vmatpush3.msra.mxu0 %v7522_v10  ;;  %6307 = vmatprep.subr.mxu1 %v7050_v48 }
 0x68e   : > { %6289 = vmatmul.mubr.msk.f32.vlgmr.msra.gmra.mxu0 %vm2191_vm4, %v8030_v4  ;;  %6294 = vmatmul.mubr.msk.f32.vlgmr.msra.gmra.mxu1 %vm2191_vm4, %v6590_v42 }
 0x68f   : > { %6308 = vmatpush3.xpose.msk.msra.mxu1 %vm2191_vm4, %v7777_v17  ;;  %6311 = vmatprep.mubr.msk.f32.mxu1 %vm7051_vm5, %v7050_v48 }
 0x690   : > { %6309 = vmatprep.subr.mxu1 %v7050_v48 }
 0x693   : > { %6310 = vmatpush3.xpose.msk.msra.mxu1 %vm2191_vm4, %v7779_v63 }
 0x694   : > { %6321 = vmatprep.subr.mxu1 %v7050_v48 }
 0x696   : > { %6312 = vmatmul.mubr.msk.f32.vlgmr.msra.gmra.mxu1 %vm2191_vm4, %v7502_v0 }
 0x697   : > { %6322 = vmatpush3.xpose.msk.msra.mxu1 %vm2191_vm4, %v7806_v43  ;;  %6325 = vmatprep.mubr.msk.f32.mxu1 %vm7051_vm5, %v7050_v48 }
 0x698   : > { %6323 = vmatprep.subr.mxu1 %v7050_v48 }
 0x69b   : > { %6324 = vmatpush3.xpose.msk.msra.mxu1 %vm2191_vm4, %v7817_v45 }
 0x69c   : > { %6335 = vmatprep.subr.mxu1 %v7050_v48 }
 0x69e   : > { %6326 = vmatmul.mubr.msk.f32.vlgmr.msra.gmra.mxu1 %vm2191_vm4, %v7506_v2 }
 0x69f   : > { %6336 = vmatpush3.msra.mxu1 %v8033_v7  ;;  %6339 = vmatprep.mubr.msk.f32.mxu1 %vm7051_vm5, %v7050_v48 }
 0x6a0   : > { %6337 = vmatprep.subr.mxu1 %v7050_v48 }
 0x6a1   : > { %6338 = vmatpush3.msra.mxu1 %v8039_v53 }
 0x6a2   : > { %6342 = vmatprep.subr.mxu1 %v7050_v48 }
 0x6e9   : > { %v3262_v9 = vpop.xlane.xlu1 %3261 }
 0x6ed   : > { %v3286_v11 = vpop.xlane.xlu1 %3285 }
 0x6ee   : > { %v3306_v27 = vadd.f32 %v3286_v11, %v3262_v9 }
 0x6f0   : > { %6597 = vrcp.f32 %v3306_v27 }
 0x6f5   : > { %v3259_v0 = vpop.xlane.xlu0 %3258 }
 0x6f7   : > { %v3283_v63 = vpop.xlane.xlu1 %3282 }
 0x6f8   : > { %v3305_v13 = vadd.f32 %v3283_v63, %v3259_v0 }
 0x6f9   : > { %v3268_v8 = vpop.xlane.xlu0 %3267 }
 0x6fa   : > { %6599 = vrcp.f32 %v3305_v13 }
 0x6fb   : > { %v3265_v2 = vpop.xlane.xlu1 %3264 }
 0x6fd   : > { %v3292_v10 = vpop.xlane.xlu0 %3291  ;;  %v6598_v38 = vpop.eup %6597 }
 0x6fe   : > { %v3308_v21 = vadd.f32 %v3292_v10, %v3268_v8 }
 0x700   : > { %v3274_v59 = vpop.xlane.xlu1 %3273  ;;  %6601 = vrcp.f32 %v3308_v21 }
 0x701   : > { %v3289_v17 = vpop.xlane.xlu0 %3288 }
 0x702   : > { %v3307_v29 = vadd.f32 %v3289_v17, %v3265_v2 }
 0x704   : > { %v3295_v14 = vpop.xlane.xlu1 %3294 }
 0x705   : > { %v3271_v43 = vpop.xlane.xlu0 %3270 }
 0x706   : > { %v3309_v44 = vadd.f32 %v3295_v14, %v3271_v43 }
 0x707   : > { %v6600_v6 = vpop.eup %6599 }
 0x708   : > { %v3298_v4 = vpop.xlane.xlu1 %3297 }
 0x709   : > { %v3280_v45 = vpop.xlane.xlu0 %3279  ;;  %v3310_v53 = vadd.f32 %v3298_v4, %v3274_v59 }
 0x70b   : > { %6603 = vrcp.f32 %v3310_v53 }
 0x70d   : > { %v3277_v56 = vpop.xlane.xlu0 %3276  ;;  %v6602_v20 = vpop.eup %6601 }
 0x711   : > { %v3301_v18 = vpop.xlane.xlu0 %3300 }
 0x712   : > { %v3311_v40 = vadd.f32 %v3301_v18, %v3277_v56 }
 0x715   : > { %v3304_v12 = vpop.xlane.xlu0 %3303 }
 0x716   : > { %v3312_v58 = vadd.f32 %v3304_v12, %v3280_v45 }
 0x718   : > { %6605 = vrcp.f32 %v3312_v58  ;;  %v6604_v9 = vpop.eup %6603 }
 0x719   : > { %6607 = vrcp.f32 %v3307_v29 }
 0x71a   : > { %6609 = vrcp.f32 %v3309_v44 }
 0x71b   : > { %6611 = vrcp.f32 %v3311_v40 }
 0x725   : > { %v6606_v17 = vpop.eup %6605 }
 0x726   : > { %v6608_v14 = vpop.eup %6607 }
 0x727   : > { %v6610_v27 = vpop.eup %6609 }
 0x728   : > { %v6612_v4 = vpop.eup %6611 }
 0x735   : > { %v3390_v41 = vpop.f32.mrf.mxu0  ;;  %v3463_v25 = vpop.f32.mrf.mxu1 }
 0x737   : > { %v6240_v32 = vpop.f32.mrf.mxu0  ;;  %v6245_v49 = vpop.f32.mrf.mxu1 }
 0x73b   : > { %v3536_v7 = vpop.f32.mrf.mxu0 }
 0x73c   : > { %v3609_v52 = vpop.f32.mrf.mxu1 }
 0x73d   : > { %v6250_v15 = vpop.f32.mrf.mxu0 }
 0x73e   : > { %v6255_v46 = vpop.f32.mrf.mxu1 }
 0x741   : > { %v3682_v35 = vpop.f32.mrf.mxu0  ;;  %v3755_v24 = vpop.f32.mrf.mxu1 }
 0x743   : > { %v6260_v54 = vpop.f32.mrf.mxu0  ;;  %v6265_v50 = vpop.f32.mrf.mxu1 }
 0x745   : > { %v3828_v28 = vpop.f32.mrf.mxu0  ;;  %v3901_v62 = vpop.f32.mrf.mxu1 }
 0x747   : > { %v6270_v34 = vpop.f32.mrf.mxu0  ;;  %v6275_v39 = vpop.f32.mrf.mxu1 }
 0x749   : > { %v6280_v42 = vpop.f32.mrf.mxu0  ;;  %v6285_v5 = vpop.f32.mrf.mxu1 }
 0x74a   : > { %v3983_v31 = vadd.f32 %v6280_v42, %v3463_v25  ;;  %v4064_v60 = vadd.f32 %v6285_v5, %v3609_v52 }
 0x74b   : > { %v3977_v16 = vpop.f32.mrf.mxu0  ;;  %v4058_v57 = vpop.f32.mrf.mxu1 }
 0x74c   : > { %v4230_v63 = vmul.f32 %v6598_v38, %v3983_v31  ;;  %v4232_v43 = vmul.f32 %v6602_v20, %v4064_v60  ;;  %v3978_v2 = vadd.f32 %v3977_v16, %v3390_v41  ;;  %v4059_v45 = vadd.f32 %v4058_v57, %v3536_v7 }
 0x74e   : > { %v6290_v0 = vpop.f32.mrf.mxu0  ;;  %v6295_v8 = vpop.f32.mrf.mxu1  ;;  %v4229_v53 = vmul.f32 %v6600_v6, %v3978_v2  ;;  %v4231_v15 = vmul.f32 %v6608_v14, %v4059_v45 }
 0x74f   : > { %v4145_v10 = vadd.f32 %v6290_v0, %v3755_v24  ;;  %v4226_v11 = vadd.f32 %v6295_v8, %v3901_v62 }
 0x750   : > { %v4139_v59 = vpop.f32.mrf.mxu0  ;;  %v4220_v56 = vpop.f32.mrf.mxu1 }
 0x751   : > { %v4234_v18 = vmul.f32 %v6604_v9, %v4145_v10  ;;  %v4236_v32 = vmul.f32 %v6606_v17, %v4226_v11  ;;  %v4140_v49 = vadd.f32 %v4139_v59, %v3682_v35  ;;  %v4221_v25 = vadd.f32 %v4220_v56, %v3828_v28  ;;  %v4544_v59 = vld [vmem:[#allocation17 + $0x18] sm:$0xff]  ;;  %v4543_v56 = vld [vmem:[#allocation17 + $0x10] sm:$0xff] }
 0x752   : > { %6296 = vmatprep.subr.mxu0 %v4544_v59 }
 0x753   : > { %v4305_v12 = vcombine.low %v4230_v63, %v4234_v18  ;;  %v4306_v13 = vcombine.high %v4230_v63, %v4234_v18  ;;  %v4321_v52 = vcombine.low %v4232_v43, %v4236_v32  ;;  %v4322_v21 = vcombine.high %v4232_v43, %v4236_v32  ;;  %6297 = vmatpush3.msra.mxu0 %v4544_v59 }
 0x754   : > { %v4233_v46 = vmul.f32 %v6610_v27, %v4140_v49  ;;  %v4235_v58 = vmul.f32 %v6612_v4, %v4221_v25  ;;  %6298 = vmatprep.subr.mxu0 %v4543_v56 }
 0x755   : > { %v4313_v41 = vrot.slane %v4305_v12, %v7636_v22  ;;  %v4320_v7 = vrot.slane %v4306_v13, %v7636_v22  ;;  %v4329_v29 = vrot.slane %v4321_v52, %v7636_v22  ;;  %v4336_v44 = vrot.slane %v4322_v21, %v7636_v22  ;;  %6299 = vmatpush3.msra.mxu0 %v4543_v56 }
 0x756   : > { %v4237_v35 = vcombine.low %v4229_v53, %v4233_v46  ;;  %v4238_v24 = vcombine.high %v4229_v53, %v4233_v46  ;;  %v4253_v40 = vcombine.low %v4231_v15, %v4235_v58  ;;  %v4254_v54 = vcombine.high %v4231_v15, %v4235_v58 }
 0x757   : > { %v4337_v50 = vcombine.low %v4313_v41, %v4329_v29  ;;  %v4338_v28 = vcombine.high %v4313_v41, %v4329_v29  ;;  %v4353_v62 = vcombine.low %v4320_v7, %v4336_v44  ;;  %v4354_v34 = vcombine.high %v4320_v7, %v4336_v44  ;;  %v4542_v7 = vld [vmem:[#allocation17 + $0x8] sm:$0xff]  ;;  %v4541_v29 = vld [vmem:[#allocation17] sm:$0xff] }
 0x758   : > { %v4245_v39 = vrot.slane %v4237_v35, %v7636_v22  ;;  %v4252_v42 = vrot.slane %v4238_v24, %v7636_v22  ;;  %v4261_v5 = vrot.slane %v4253_v40, %v7636_v22  ;;  %v4268_v16 = vrot.slane %v4254_v54, %v7636_v22  ;;  %6300 = vmatprep.subr.mxu0 %v4542_v7 }
 0x759   : > { %v4345_v57 = vrot.slane %v4337_v50, %v7659_v36  ;;  %v4352_v38 = vrot.slane %v4338_v28, %v7659_v36  ;;  %v4361_v31 = vrot.slane %v4353_v62, %v7659_v36  ;;  %v4368_v60 = vrot.slane %v4354_v34, %v7659_v36  ;;  %6301 = vmatpush3.msra.mxu0 %v4542_v7 }
 0x75a   : > { %v4269_v6 = vcombine.low %v4245_v39, %v4261_v5  ;;  %v4270_v20 = vcombine.high %v4245_v39, %v4261_v5  ;;  %v4285_v0 = vcombine.low %v4252_v42, %v4268_v16  ;;  %v4286_v8 = vcombine.high %v4252_v42, %v4268_v16  ;;  %6302 = vmatprep.subr.mxu0 %v4541_v29 }
 0x75b   : > { %v4441_v9 = vcombine.low %v4345_v57, %v4352_v38  ;;  %v5976_v10 = vcombine.high %v4345_v57, %v4352_v38  ;;  %v4457_v11 = vcombine.low %v4361_v31, %v4368_v60  ;;  %v5977_v17 = vcombine.high %v4361_v31, %v4368_v60  ;;  %6303 = vmatpush3.msra.mxu0 %v4541_v29 }
 0x75c   : > { %v4277_v63 = vrot.slane %v4269_v6, %v7659_v36  ;;  %v4284_v43 = vrot.slane %v4270_v20, %v7659_v36  ;;  %v4293_v2 = vrot.slane %v4285_v0, %v7659_v36  ;;  %v4300_v45 = vrot.slane %v4286_v8, %v7659_v36  ;;  %6314 = vmatprep.subr.mxu0 %v7050_v48  ;;  %v4703_v8 = vpop.f32.mrf.mxu1 }
 0x75d   : > { %v4448_v14 = vrot.slane %v4441_v9, %v7636_v22  ;;  %v4456_v18 = vrot.slane %v5976_v10, %v7636_v22  ;;  %v4464_v32 = vrot.slane %v4457_v11, %v7636_v22  ;;  %v4472_v49 = vrot.slane %v5977_v17, %v7636_v22  ;;  %v5980_v11 = vld [vmem:[%s475_s24] ss:$0 sm:$0xff] }
 0x75e   : > { %v4373_v25 = vcombine.low %v4277_v63, %v4284_v43  ;;  %v5974_v27 = vcombine.high %v4277_v63, %v4284_v43  ;;  %v4389_v4 = vcombine.low %v4293_v2, %v4300_v45  ;;  %v5975_v12 = vcombine.high %v4293_v2, %v4300_v45  ;;  %v6313_v9 = vpop.f32.mrf.mxu1 }
 0x75f   : > { %v4474_v13 = vcombine.high %v4448_v14, %v4456_v18  ;;  %v4490_v52 = vcombine.high %v4464_v32, %v4472_v49  ;;  %v4473_v21 = vcombine.low %v4448_v14, %v4456_v18  ;;  %v4489_v53 = vcombine.low %v4464_v32, %v4472_v49 }
 0x760   : > { %v4380_v15 = vrot.slane %v4373_v25, %v7636_v22  ;;  %v4388_v46 = vrot.slane %v5974_v27, %v7636_v22  ;;  %v4396_v58 = vrot.slane %v4389_v4, %v7636_v22  ;;  %v4404_v41 = vrot.slane %v5975_v12, %v7636_v22  ;;  %v4849_v10 = vpop.f32.mrf.mxu1 }
 0x761   : > { %v4488_v44 = vrot.slane %v4474_v13, %v7659_v36  ;;  %v4504_v35 = vrot.slane %v4490_v52, %v7659_v36  ;;  %v4481_v24 = vrot.slane %v4473_v21, %v7659_v36  ;;  %v4497_v40 = vrot.slane %v4489_v53, %v7659_v36 }
 0x762   : > { %v4405_v54 = vcombine.low %v4380_v15, %v4388_v46  ;;  %v4421_v50 = vcombine.low %v4396_v58, %v4404_v41  ;;  %v4406_v28 = vcombine.high %v4380_v15, %v4388_v46  ;;  %v4422_v62 = vcombine.high %v4396_v58, %v4404_v41  ;;  %v6327_v17 = vpop.f32.mrf.mxu1 }
 0x763   : > { %v4507_v34 = vcombine.low %v4488_v44, %v4504_v35  ;;  %v4506_v39 = vcombine.high %v4481_v24, %v4497_v40  ;;  %v4505_v42 = vcombine.low %v4481_v24, %v4497_v40  ;;  %v4508_v0 = vcombine.high %v4488_v44, %v4504_v35  ;;  %v4927_v35 = vld [vmem:[#allocation2 + $0x8] sm:$0xff] }
 0x764   : > { %v4413_v5 = vrot.slane %v4405_v54, %v7659_v36  ;;  %v4429_v16 = vrot.slane %v4421_v50, %v7659_v36  ;;  %v4420_v57 = vrot.slane %v4406_v28, %v7659_v36  ;;  %v4436_v38 = vrot.slane %v4422_v62, %v7659_v36  ;;  %v4929_v62 = vld [vmem:[#allocation2 + $0x18] sm:$0xff] }
 0x765   : > { %4521 = vrot.lane.b32.xlu1 %v4507_v34, %s7053_s8  ;;  %4513 = vrot.lane.b32.xlu0 %v4506_v39, %s7054_s19  ;;  %v8198_v63 = vadd.f32 %v5980_v11, %v4703_v8  ;;  %v8200_v43 = vadd.f32 %v5980_v11, %v4849_v10 }
 0x766   : > { %v4437_v31 = vcombine.low %v4413_v5, %v4429_v16  ;;  %v4438_v60 = vcombine.high %v4413_v5, %v4429_v16  ;;  %v4440_v6 = vcombine.high %v4420_v57, %v4436_v38  ;;  %v4439_v20 = vcombine.low %v4420_v57, %v4436_v38 }
 0x767   : > { %v4930_v2 = vsel %vm4535_vm6, %v8198_v63, -inf  ;;  %v4936_v45 = vsel %vm4535_vm6, %v8200_v43, -inf }
 0x769   : > { %4511 = vrot.lane.b32.xlu1 %v4438_v60, %s7054_s19  ;;  %4527 = vrot.lane.b32.xlu0 %v4440_v6, %s7055_s12 }
 0x76d   : > { %4519 = vrot.lane.b32.xlu1 %v4439_v20, %s7053_s8 }
 0x771   : > { %4529 = vrot.lane.b32.xlu1 %v4508_v0, %s7055_s12 }
 0x788   : > { %4931 = vmax.xlane.f32.xlu0 %v4930_v2 }
 0x78c   : > { %4937 = vmax.xlane.f32.xlu0 %v4936_v45 }
 0x7d7   : > { %v4522_v59 = vpop.permute.xlu1 %4521  ;;  %v4514_v56 = vpop.permute.xlu0 %4513 }
 0x7d8   : > { %v4534_v49 = vsel %vm2191_vm4, %v4505_v42, %v4514_v56 }
 0x7d9   : > { %v4537_v13 = vsel %vm4535_vm6, %v4534_v49, %v4522_v59 }
 0x7db   : > { %v4512_v14 = vpop.permute.xlu1 %4511  ;;  %v4528_v25 = vpop.permute.xlu0 %4527 }
 0x7dc   : > { %v4533_v18 = vsel %vm2191_vm4, %v4437_v31, %v4512_v14 }
 0x7df   : > { %v4520_v32 = vpop.permute.xlu1 %4519 }
 0x7e0   : > { %v4536_v27 = vsel %vm4535_vm6, %v4533_v18, %v4520_v32 }
 0x7e1   : > { %v4539_v4 = vsel %vm4538_vm7, %v4536_v27, %v4528_v25  ;;  %v4990_v27 = vld [vmem:[#allocation3] sm:$0xff] }
 0x7e2   : > { %6304 = vmatprep.mubr.msk.f32.mxu0 %vm1223_vm3, %v4539_v4 }
 0x7e3   : > { %v4530_v12 = vpop.permute.xlu1 %4529 }
 0x7e4   : > { %v4540_v52 = vsel %vm4538_vm7, %v4537_v13, %v4530_v12 }
 0x7e5   : > { %6305 = vmatmul.mubr.msk.f32.vlgmr.msra.gmra.mxu0 %vm1223_vm3, %v4540_v52 }
 0x7e6   : > { %6315 = vmatpush3.xpose.msk.msra.mxu0 %vm2191_vm4, %v7786_v30  ;;  %6318 = vmatprep.mubr.msk.f32.mxu0 %vm7051_vm5, %v7050_v48 }
 0x7e7   : > { %6316 = vmatprep.subr.mxu0 %v7050_v48 }
 0x7ea   : > { %6317 = vmatpush3.xpose.msk.msra.mxu0 %vm2191_vm4, %v7797_v33 }
 0x7eb   : > { %6328 = vmatprep.subr.mxu0 %v7050_v48 }
 0x7ed   : > { %6319 = vmatmul.mubr.msk.f32.vlgmr.msra.gmra.mxu0 %vm2191_vm4, %v7504_v1  ;;  %v4926_v1 = vld [vmem:[#allocation2] sm:$0xff] }
 0x7ee   : > { %6329 = vmatpush3.xpose.msk.msra.mxu0 %vm2191_vm4, %v7824_v37  ;;  %6332 = vmatprep.mubr.msk.f32.mxu0 %vm7051_vm5, %v7050_v48  ;;  %v7056_v37 = vmov 0  }
 0x7ef   : > { %6330 = vmatprep.subr.mxu0 %v7050_v48  ;;  %6563 = vset.pattern.permute.xlu1 %v7056_v37 }
 0x7f0   : > { %6564 = vset.pattern.permute.xlu0 %v7056_v37 }
 0x7f2   : > { %6331 = vmatpush3.xpose.msk.msra.mxu0 %vm2191_vm4, %v7835_v47 }
 0x7f3   : > { %6349 = vmatprep.subr.mxu0 %v7050_v48 }
 0x7f5   : > { %6333 = vmatmul.mubr.msk.f32.vlgmr.msra.gmra.mxu0 %vm2191_vm4, %v7508_v3  ;;  %v4928_v3 = vld [vmem:[#allocation2 + $0x10] sm:$0xff] }
 0x7f6   : > { %6350 = vmatpush3.msra.mxu0 %v8078_v19  ;;  %6353 = vmatprep.mubr.msk.f32.mxu0 %vm7051_vm5, %v7050_v48 }
 0x7f7   : > { %6351 = vmatprep.subr.mxu0 %v7050_v48 }
 0x7f8   : > { %6352 = vmatpush3.msra.mxu0 %v8076_v51 }
 0x811   : > { %v4932_v30 = vpop.xlane.xlu0 %4931 }
 0x812   : > { %v4942_v33 = vmax.f32 %v4926_v1, %v4932_v30 }
 0x814   : > { %5347 = vst.msk [vmem:[#allocation2] sm:$0xff] %vm5014_vm8, %v4942_v33  ;;  %v4946_v6 = vsub.f32 %v4926_v1, %v4942_v33 }
 0x815   : > { %v4938_v47 = vpop.xlane.xlu0 %4937 }
 0x816   : > { %v4944_v19 = vmax.f32 %v4928_v3, %v4938_v47  ;;  %v4950_v0 = vmul.f32 1.442695, %v4946_v6 }
 0x818   : > { %5349 = vst.msk [vmem:[#allocation2 + $0x10] sm:$0xff] %vm5014_vm8, %v4944_v19  ;;  %v4948_v8 = vsub.f32 %v4928_v3, %v4944_v19  ;;  %v5021_v3 = vld [vmem:[#allocation4 + $0x10] sm:$0xff] }
 0x81a   : > { %v4954_v9 = vmul.f32 1.442695, %v4948_v8 }
 0x8a5   : > { %v6306_v21 = vpop.f32.mrf.mxu0 }
 0x8a6   : > { %4627 = vst.msk [vmem:[%s7528_s20 + $0x8] sm:$0xff] %vm1223_vm3, %v6306_v21 }
 0x8a7   : > { %v4617_v53 = vpop.f32.mrf.mxu0 }
 0x8a8   : > { %4626 = vst.msk [vmem:[%s7528_s20] sm:$0xff] %vm1223_vm3, %v4617_v53 }
 0x8ad   : > { %v4776_v51 = vpop.f32.mrf.mxu0 }
 0x8ae   : > { %v4777_v15 = vadd.f32 %v5980_v11, %v4776_v51 }
 0x8af   : > { %v6320_v46 = vpop.f32.mrf.mxu0 }
 0x8b0   : > { %v4933_v58 = vsel %vm4535_vm6, %v4777_v15, -inf }
 0x8b1   : > { %4934 = vmax.xlane.f32.xlu1 %v4933_v58 }
 0x8b5   : > { %v4922_v41 = vpop.f32.mrf.mxu0 }
 0x8b6   : > { %v4923_v7 = vadd.f32 %v5980_v11, %v4922_v41  ;;  %v4991_v41 = vld [vmem:[#allocation3 + $0x8] sm:$0xff] }
 0x8b7   : > { %v6334_v29 = vpop.f32.mrf.mxu0 }
 0x8b8   : > { %v4939_v44 = vsel %vm4535_vm6, %v4923_v7, -inf }
 0x8b9   : > { %4940 = vmax.xlane.f32.xlu0 %v4939_v44 }
 0x8c2   : > { %4960 = vperm.xlu1 %6563, %v4942_v33   ;;  %v5019_v33 = vld [vmem:[#allocation4] sm:$0xff] }
 0x8c6   : > { %4970 = vperm.xlu1 %6563, %v4944_v19  }
 0x93a   : > { %v4935_v24 = vpop.xlane.xlu1 %4934 }
 0x93b   : > { %v4943_v40 = vmax.f32 %v4927_v35, %v4935_v24 }
 0x93d   : > { %v4947_v54 = vsub.f32 %v4927_v35, %v4943_v40  ;;  %5348 = vst.msk [vmem:[#allocation2 + $0x8] sm:$0xff] %vm5014_vm8, %v4943_v40  ;;  %4965 = vperm.xlu0 %6564, %v4943_v40   ;;  %v4993_v35 = vld [vmem:[#allocation3 + $0x18] sm:$0xff] }
 0x93e   : > { %v4961_v50 = vpop.permute.xlu1 %4960 }
 0x93f   : > { %v4978_v28 = vsub.f32 %v8198_v63, %v4961_v50  ;;  %v4952_v14 = vmul.f32 1.442695, %v4947_v54  ;;  %v5020_v50 = vld [vmem:[#allocation4 + $0x8] sm:$0xff] }
 0x941   : > { %v4982_v34 = vmul.f32 1.442695, %v4978_v28 }
 0x942   : > { %v4971_v39 = vpop.permute.xlu1 %4970  ;;  %v4941_v42 = vpop.xlane.xlu0 %4940 }
 0x943   : > { %6613 = vpow2.f32 %v4982_v34  ;;  %v4980_v5 = vsub.f32 %v8200_v43, %v4971_v39  ;;  %v4945_v16 = vmax.f32 %v4929_v62, %v4941_v42 }
 0x945   : > { %v4986_v57 = vmul.f32 1.442695, %v4980_v5  ;;  %v4949_v38 = vsub.f32 %v4929_v62, %v4945_v16  ;;  %5350 = vst.msk [vmem:[#allocation2 + $0x18] sm:$0xff] %vm5014_vm8, %v4945_v16  ;;  %4975 = vperm.xlu1 %6563, %v4945_v16   ;;  %v5022_v5 = vld [vmem:[#allocation4 + $0x18] sm:$0xff] }
 0x947   : > { %6615 = vpow2.f32 %v4986_v57  ;;  %v4956_v32 = vmul.f32 1.442695, %v4949_v38 }
 0x948   : > { %6617 = vpow2.f32 %v4950_v0 }
 0x949   : > { %6619 = vpow2.f32 %v4954_v9 }
 0x950   : > { %v6614_v31 = vpop.eup %6613 }
 0x951   : > { %6340 = vmatmul.mubr.msk.f32.vlgmr.msra.gmra.mxu1 %vm4535_vm6, %v6614_v31  ;;  %v4998_v20 = vsel %vm4535_vm6, %v6614_v31, 0.0 }
 0x952   : > { %6343 = vmatpush3.msra.mxu1 %v8058_v61  ;;  %6346 = vmatprep.mubr.msk.f32.mxu1 %vm7051_vm5, %v7050_v48 }
 0x953   : > { %6344 = vmatprep.subr.mxu1 %v7050_v48 }
 0x954   : > { %v6616_v60 = vpop.eup %6615  ;;  %6345 = vmatpush3.msra.mxu1 %v8056_v55 }
 0x955   : > { %6354 = vmatmul.mubr.msk.f32.vlgmr.msra.gmra.mxu0 %vm4535_vm6, %v6616_v60  ;;  %6356 = vmatprep.subr.mxu1 %v7050_v48  ;;  %v5004_v61 = vsel %vm4535_vm6, %v6616_v60, 0.0  ;;  %v6618_v10 = vpop.eup %6617 }
 0x956   : > { %v6620_v11 = vpop.eup %6619  ;;  %v4994_v4 = vmul.f32 %v6618_v10, %v4990_v27 }
 0x969   : > { %4999 = vadd.xlane.f32.xlu1 %v4998_v20 }
 0x96d   : > { %5005 = vadd.xlane.f32.xlu1 %v5004_v61 }
 0x97e   : > { %5025 = vperm.xlu1 %6563, %v6618_v10  }
 0x982   : > { %5035 = vperm.xlu1 %6563, %v6620_v11  }
 0x9b8   : > { %v4966_v55 = vpop.permute.xlu0 %4965 }
 0x9b9   : > { %v4979_v17 = vsub.f32 %v4777_v15, %v4966_v55 }
 0x9bb   : > { %v4984_v63 = vmul.f32 1.442695, %v4979_v17 }
 0x9bd   : > { %6621 = vpow2.f32 %v4984_v63 }
 0x9c0   : > { %v4976_v43 = vpop.permute.xlu1 %4975 }
 0x9c1   : > { %v4981_v2 = vsub.f32 %v4923_v7, %v4976_v43 }
 0x9c3   : > { %v4988_v45 = vmul.f32 1.442695, %v4981_v2 }
 0x9c5   : > { %6623 = vpow2.f32 %v4988_v45 }
 0x9c6   : > { %6625 = vpow2.f32 %v4952_v14 }
 0x9c7   : > { %6627 = vpow2.f32 %v4956_v32 }
 0x9ca   : > { %v6622_v59 = vpop.eup %6621 }
 0x9cb   : > { %6347 = vmatmul.mubr.msk.f32.vlgmr.msra.gmra.mxu1 %vm4535_vm6, %v6622_v59  ;;  %v5001_v56 = vsel %vm4535_vm6, %v6622_v59, 0.0 }
 0x9cc   : > { %6357 = vmatpush3.msra.mxu1 %v8096_v26  ;;  %5002 = vadd.xlane.f32.xlu0 %v5001_v56 }
 0x9cd   : > { %6358 = vmatprep.subr.mxu1 %v7050_v48  ;;  %6360 = vmatprep.mubr.msk.f32.mxu1 %vm7051_vm5, %v7050_v48  ;;  %v4992_v48 = vld [vmem:[#allocation3 + $0x10] sm:$0xff] }
 0x9ce   : > { %6359 = vmatpush3.msra.mxu1 %v8094_v23  ;;  %v4996_v23 = vmul.f32 %v6620_v11, %v4992_v48 }
 0x9d2   : > { %v6624_v18 = vpop.eup %6623 }
 0x9d3   : > { %6361 = vmatmul.mubr.msk.f32.vlgmr.msra.gmra.mxu1 %vm4535_vm6, %v6624_v18  ;;  %v5007_v49 = vsel %vm4535_vm6, %v6624_v18, 0.0  ;;  %v6626_v25 = vpop.eup %6625 }
 0x9d4   : > { %5008 = vadd.xlane.f32.xlu1 %v5007_v49  ;;  %v6628_v26 = vpop.eup %6627  ;;  %v4995_v7 = vmul.f32 %v6626_v25, %v4991_v41 }
 0x9d5   : > { %v4997_v24 = vmul.f32 %v6628_v26, %v4993_v35 }
 0x9e2   : > { %5030 = vperm.xlu0 %6564, %v6626_v25  }
 0x9e5   : > { %5040 = vperm.xlu1 %6563, %v6628_v26  }
 0x9f2   : > { %v5000_v12 = vpop.xlane.xlu1 %4999 }
 0x9f3   : > { %v5010_v13 = vadd.f32 %v5000_v12, %v4994_v4 }
 0x9f5   : > { %5015 = vst.msk [vmem:[#allocation3] sm:$0xff] %vm5014_vm8, %v5010_v13 }
 0x9f6   : > { %v5006_v52 = vpop.xlane.xlu1 %5005 }
 0x9f7   : > { %v5012_v1 = vadd.f32 %v5006_v52, %v4996_v23 }
 0x9f9   : > { %5017 = vst.msk [vmem:[#allocation3 + $0x10] sm:$0xff] %vm5014_vm8, %v5012_v1 }
 0x9fa   : > { %v5026_v30 = vpop.permute.xlu1 %5025 }
 0x9fb   : > { %v5043_v37 = vmul.f32 %v5026_v30, %v5019_v33 }
 0x9fe   : > { %v5036_v47 = vpop.permute.xlu1 %5035 }
 0x9ff   : > { %v5045_v51 = vmul.f32 %v5036_v47, %v5021_v3 }
 0xa11   : > { %v5116_v19 = vpop.f32.mrf.mxu1 }
 0xa12   : > { %v5339_v21 = vadd.f32 %v5116_v19, %v5043_v37 }
 0xa13   : > { %v6341_v53 = vpop.f32.mrf.mxu1 }
 0xa14   : > { %5343 = vst.msk [vmem:[#allocation4] sm:$0xff] %vm2191_vm4, %v5339_v21 }
 0xa15   : > { %v5262_v15 = vpop.f32.mrf.mxu0 }
 0xa16   : > { %v5341_v46 = vadd.f32 %v5262_v15, %v5045_v51 }
 0xa17   : > { %v6355_v58 = vpop.f32.mrf.mxu0 }
 0xa18   : > { %5345 = vst.msk [vmem:[#allocation4 + $0x10] sm:$0xff] %vm2191_vm4, %v5341_v46 }
 0xa55   : > { %v5003_v29 = vpop.xlane.xlu0 %5002 }
 0xa56   : > { %v5011_v44 = vadd.f32 %v5003_v29, %v4995_v7 }
 0xa58   : > { %5016 = vst.msk [vmem:[#allocation3 + $0x8] sm:$0xff] %vm5014_vm8, %v5011_v44 }
 0xa5d   : > { %v5009_v40 = vpop.xlane.xlu1 %5008  ;;  %v5031_v28 = vpop.permute.xlu0 %5030 }
 0xa5e   : > { %v5013_v54 = vadd.f32 %v5009_v40, %v4997_v24  ;;  %v5044_v62 = vmul.f32 %v5031_v28, %v5020_v50 }
 0xa60   : > { %5018 = vst.msk [vmem:[#allocation3 + $0x18] sm:$0xff] %vm5014_vm8, %v5013_v54 }
 0xa61   : > { %v5041_v16 = vpop.permute.xlu1 %5040 }
 0xa62   : > { %v5046_v57 = vmul.f32 %v5041_v16, %v5022_v5 }
 0xa8b   : > { %v5189_v34 = vpop.f32.mrf.mxu1 }
 0xa8c   : > { %v5340_v39 = vadd.f32 %v5189_v34, %v5044_v62 }
 0xa8d   : > { %v6348_v42 = vpop.f32.mrf.mxu1 }
 0xa8e   : > { %5344 = vst.msk [vmem:[#allocation4 + $0x8] sm:$0xff] %vm2191_vm4, %v5340_v39 }
 0xa92   : > { %5354 = sbr.rel (%p5997_p6) target bundleno = 3190 (0xc76), region = 92 }
 0xa93   : > { %v5335_v38 = vpop.f32.mrf.mxu1 }
 0xa94   : > { %v5342_v31 = vadd.f32 %v5335_v38, %v5046_v57 }
 0xa95   : > { %v6362_v60 = vpop.f32.mrf.mxu1 }
 0xa96   : > { %5346 = vst.msk [vmem:[#allocation4 + $0x18] sm:$0xff] %vm2191_vm4, %v5342_v31 }
 0xa97   : > { %v5361_v6 = vld [vmem:[#allocation3 + $0x10] sm:$0xff]  ;;  %v5359_v20 = vld [vmem:[#allocation3] sm:$0xff]  ;;  %v5362_v0 = vld [vmem:[#allocation3 + $0x18] sm:$0xff]  ;;  %v7057_v8 = vmov 0   ;;  %v7058_v63 = vmov 0.0   ;;  %vm7059_vm9 = vmmov 0  }
 0xa98   : > { %6630 = vset.pattern.permute.xlu1 %v7057_v8  ;;  %6629 = vset.pattern.permute.xlu0 %v7057_v8  ;;  %6631 = vrcp.f32 %v5361_v6  ;;  %v5360_v61 = vld [vmem:[#allocation3 + $0x8] sm:$0xff]  ;;  %v5545_v17 = vld [vmem:[#allocation17 + $0x18] sm:$0xff]  ;;  %v5357_v43 = vld [vmem:[#allocation4 + $0x10] sm:$0xff] }
 0xa99   : > { %6633 = vrcp.f32 %v5359_v20  ;;  %6363 = vmatprep.subr.mxu0 %v7058_v63  ;;  %v5355_v2 = vld [vmem:[#allocation4] sm:$0xff]  ;;  %v5356_v32 = vld [vmem:[#allocation4 + $0x8] sm:$0xff]  ;;  %v5544_v19 = vld [vmem:[#allocation17 + $0x10] sm:$0xff]  ;;  %6371 = vmatprep.mubr.msk.f32.mxu0 %vm7059_vm9, %v7058_v63 }
 0xa9a   : > { %6635 = vrcp.f32 %v5362_v0  ;;  %6364 = vmatpush3.msra.mxu0 %v5545_v17  ;;  %v5543_v21 = vld [vmem:[#allocation17 + $0x8] sm:$0xff]  ;;  %v5542_v44 = vld [vmem:[#allocation17] sm:$0xff] }
 0xa9b   : > { %6637 = vrcp.f32 %v5360_v61  ;;  %6365 = vmatprep.subr.mxu0 %v7058_v63 }
 0xa9c   : > { %6366 = vmatpush3.msra.mxu0 %v5544_v19 }
 0xa9d   : > { %v5358_v18 = vld [vmem:[#allocation4 + $0x18] sm:$0xff]  ;;  %6367 = vmatprep.subr.mxu0 %v7058_v63 }
 0xa9e   : > { %6368 = vmatpush3.msra.mxu0 %v5543_v21 }
 0xa9f   : > { %6369 = vmatprep.subr.mxu0 %v7058_v63 }
 0xaa0   : > { %6370 = vmatpush3.msra.mxu0 %v5542_v44 }
 0xaa5   : > { %v6632_v9 = vpop.eup %6631 }
 0xaa6   : > { %v6634_v10 = vpop.eup %6633  ;;  %5379 = vperm.xlu1 %6630, %v6632_v9  }
 0xaa7   : > { %v6636_v11 = vpop.eup %6635  ;;  %5369 = vperm.xlu0 %6629, %v6634_v10  }
 0xaa8   : > { %v6638_v55 = vpop.eup %6637 }
 0xaaa   : > { %5384 = vperm.xlu1 %6630, %v6636_v11  }
 0xaab   : > { %5374 = vperm.xlu0 %6629, %v6638_v55  }
 0xb21   : > { %v5380_v45 = vpop.permute.xlu1 %5379 }
 0xb22   : > { %v5370_v59 = vpop.permute.xlu0 %5369  ;;  %v5389_v56 = vmul.f32 %v5380_v45, %v5357_v43 }
 0xb23   : > { %v5387_v14 = vmul.f32 %v5370_v59, %v5355_v2 }
 0xb25   : > { %v5385_v49 = vpop.permute.xlu1 %5384  ;;  %v5391_v27 = vcombine.low %v5387_v14, %v5389_v56  ;;  %v5392_v4 = vcombine.high %v5387_v14, %v5389_v56 }
 0xb26   : > { %v5390_v25 = vmul.f32 %v5385_v49, %v5358_v18  ;;  %v5375_v26 = vpop.permute.xlu0 %5374 }
 0xb27   : > { %v5388_v12 = vmul.f32 %v5375_v26, %v5356_v32  ;;  %v5399_v23 = vrot.slane %v5391_v27, %v7636_v22  ;;  %v5406_v52 = vrot.slane %v5392_v4, %v7636_v22 }
 0xb29   : > { %v5407_v48 = vcombine.low %v5388_v12, %v5390_v25  ;;  %v5408_v13 = vcombine.high %v5388_v12, %v5390_v25 }
 0xb2b   : > { %v5415_v1 = vrot.slane %v5407_v48, %v7636_v22  ;;  %v5422_v30 = vrot.slane %v5408_v13, %v7636_v22 }
 0xb2d   : > { %v5423_v33 = vcombine.low %v5399_v23, %v5415_v1  ;;  %v5424_v37 = vcombine.high %v5399_v23, %v5415_v1  ;;  %v5439_v3 = vcombine.low %v5406_v52, %v5422_v30  ;;  %v5440_v47 = vcombine.high %v5406_v52, %v5422_v30 }
 0xb2f   : > { %v5431_v53 = vrot.slane %v5423_v33, %v7659_v36  ;;  %v5438_v51 = vrot.slane %v5424_v37, %v7659_v36  ;;  %v5447_v15 = vrot.slane %v5439_v3, %v7659_v36  ;;  %v5454_v46 = vrot.slane %v5440_v47, %v7659_v36 }
 0xb31   : > { %v5459_v58 = vcombine.low %v5431_v53, %v5438_v51  ;;  %v5998_v41 = vcombine.high %v5431_v53, %v5438_v51  ;;  %v5475_v7 = vcombine.low %v5447_v15, %v5454_v46  ;;  %v5999_v29 = vcombine.high %v5447_v15, %v5454_v46 }
 0xb33   : > { %v5466_v35 = vrot.slane %v5459_v58, %v7636_v22  ;;  %v5474_v24 = vrot.slane %v5998_v41, %v7636_v22  ;;  %v5482_v40 = vrot.slane %v5475_v7, %v7636_v22  ;;  %v5490_v54 = vrot.slane %v5999_v29, %v7636_v22 }
 0xb35   : > { %v5492_v50 = vcombine.high %v5466_v35, %v5474_v24  ;;  %v5508_v28 = vcombine.high %v5482_v40, %v5490_v54  ;;  %v5491_v62 = vcombine.low %v5466_v35, %v5474_v24  ;;  %v5507_v34 = vcombine.low %v5482_v40, %v5490_v54 }
 0xb37   : > { %v5506_v39 = vrot.slane %v5492_v50, %v7659_v36  ;;  %v5522_v42 = vrot.slane %v5508_v28, %v7659_v36  ;;  %v5499_v5 = vrot.slane %v5491_v62, %v7659_v36  ;;  %v5515_v16 = vrot.slane %v5507_v34, %v7659_v36 }
 0xb39   : > { %v5525_v57 = vcombine.low %v5506_v39, %v5522_v42  ;;  %v5524_v38 = vcombine.high %v5499_v5, %v5515_v16  ;;  %v5523_v31 = vcombine.low %v5499_v5, %v5515_v16  ;;  %v5526_v22 = vcombine.high %v5506_v39, %v5522_v42 }
 0xb3b   : > { %5532 = vrot.lane.b32.xlu1 %v5525_v57, %s7060_s25  ;;  %5528 = vrot.lane.b32.xlu0 %v5524_v38, %s7061_s7 }
 0xb3f   : > { %5536 = vrot.lane.b32.xlu0 %v5526_v22, %s7062_s28 }
 0xbad   : > { %v5529_v60 = vpop.permute.xlu0 %5528  ;;  %v5533_v6 = vpop.permute.xlu1 %5532 }
 0xbae   : > { %v5539_v20 = vsel %vm2191_vm4, %v5523_v31, %v5529_v60 }
 0xbaf   : > { %v5540_v8 = vsel %vm4535_vm6, %v5539_v20, %v5533_v6 }
 0xbb1   : > { %v5537_v0 = vpop.permute.xlu0 %5536 }
 0xbb2   : > { %v5541_v36 = vsel %vm4538_vm7, %v5540_v8, %v5537_v0 }
 0xbb3   : > { %6372 = vmatmul.mubr.msk.f32.vlgmr.msra.gmra.mxu0 %vm1223_vm3, %v5541_v36 }
 0xc73   : > { %v5615_v61 = vpop.f32.mrf.mxu0 }
 0xc74   : > { %5619 = vst.msk [vmem:[%s552_s29] sm:$0xff] %vm1223_vm3, %v5615_v61 }
 0xc75   : > { %v6373_v9 = vpop.f32.mrf.mxu0 }
 0xc76 PF: > { %s8506_s14 = sld [smem:[#allocation34_spill]]  ;;  %s5641_s22 = sshll.u32 %s7528_s20, 4  ;;  %s8305_s22 = int_to_ptr.vmem [resolvable:$true] %s5641_s22 }
 0xc77   : > { %s8507_s30 = sld [smem:[#allocation35_spill]]  ;;  %s5621_s9 = scalar_lea.sflag [#allocation7], %s7460_s6 }
 0xc78   : > { %s8508_s21 = sld [smem:[#allocation52_spill]]  ;;  %s6859_s15 = scalar_lea.vmem %s8305_s22, 256 }
 0xc79   : > { %p6860_p3 = scmp.ne.s32.totalorder %s8305_s22, %s6859_s15  ;;  %p8509_p12 = scmp.ne.s32.totalorder %s8469_s26, 0 }
 0xc7a   : > { %s7063_s8 = smov [#allocation19]  }
 0xc7b   : > { %p6861_p2 = pnand %p6860_p3, %p8509_p12  ;;  %s6863_s20 = sshll.u32 %s7063_s8, 4  ;;  %s6864_s20 = int_to_ptr.vmem [resolvable:$false] %s6863_s20 }
 0xc7c   : > { %s6003_s23 = sshll.u32 %s8506_s14, 1  ;;  %s6865_s12 = scalar_lea.vmem %s6864_s20, 512 }
 0xc7d   : > { %s6004_s24 = sshll.u32 %s8507_s30, 2  ;;  %p6862_p1 = pneg %p6861_p2 }
 0xc7e   : > { %s5638_s2 = sadd.s32 %s6004_s24, %s6003_s23  ;;  %p6866_p7 = scmp.lt.s32.totalorder %s8305_s22, %s6864_s20 }
 0xc7f   : > { %s6005_s3 = sshll.u32 %s5638_s2, 7  ;;  %p6867_p13 = scmp.lt.s32.totalorder %s6865_s12, %s6859_s15 }
 0xc80   : > { %s8310_s11 = scalar_lea.hbm %s8508_s21, %s6005_s3 }
 0xc81   : > { %p6868_p5 = por %p6867_p13, %p6866_p7 }
 0xc83   : > { %p6869_p10 = pnand %p6868_p5, %p6862_p1 }
 0xc85   : > { %6872 = shalt.err (!%p6869_p10)
}
 0xc86   : > { %s6873_s16 = scalar_lea.hbm %s8310_s11, 256  ;;  %s6877_s28 = scalar_lea.hbm %s8508_s21, 1024 }
 0xc87   : > { %p6874_p0 = scmp.ne.s32.totalorder %s8310_s11, %s6873_s16  ;;  %p6878_p11 = scmp.lt.s32.totalorder %s8310_s11, %s8508_s21 }
 0xc88   : > { %p6879_p8 = scmp.lt.s32.totalorder %s6877_s28, %s6873_s16 }
 0xc89   : > { %p6875_p4 = pnand %p6874_p0, %p8509_p12 }
 0xc8a   : > { %p6880_p6 = por %p6879_p8, %p6878_p11 }
 0xc8b   : > { %p6876_p9 = pneg %p6875_p4 }
 0xc8d   : > { %p6881_p3 = pnand %p6880_p6, %p6876_p9 }
 0xc8f   : > { %6884 = shalt.err (!%p6881_p3)
}
 0xc90   : > { %s7064_s24 = smov 128   ;;  %s6006_s2 = sshll.u32 %s8507_s30, 7 }
 0xc91   : > { %6394 = dma.vmem_to_hbm [thread:$0]  (%p8509_p12), %s8305_s22, 256, %s8310_s11, %s5621_s9, %s7064_s24, %s7064_s24, %s7054_s19  }
 0xc92   : > { %s5657_s3 = sshll.u32 %s552_s29, 4  ;;  %s8510_s15 = sld [smem:[#allocation53_spill]]  ;;  %s5658_s3 = int_to_ptr.vmem [resolvable:$true] %s5657_s3 }
 0xc93   : > { %s5626_s26 = scalar_lea.sflag [#allocation21], %s550_s27  ;;  %s6885_s12 = scalar_lea.vmem %s5658_s3, 128 }
 0xc94   : > { %p6886_p2 = scmp.ne.s32.totalorder %s5658_s3, %s6885_s12  ;;  %p8512_p1 = scmp.ne.s32.totalorder %s8475_s0, 0 }
 0xc95   : > { %s7065_s6 = smov [#allocation20]  }
 0xc96   : > { %p6887_p7 = pnand %p6886_p2, %p8512_p1  ;;  %s6889_s16 = sshll.u32 %s7065_s6, 4  ;;  %s6890_s16 = int_to_ptr.vmem [resolvable:$false] %s6889_s16 }
 0xc97   : > { %s6891_s25 = scalar_lea.vmem %s6890_s16, 256  ;;  %p6892_p12 = scmp.lt.s32.totalorder %s5658_s3, %s6890_s16 }
 0xc98   : > { %s8511_s8 = smov %s8510_s15  ;;  %s5655_s20 = scalar_lea.hbm %s8510_s15, %s6006_s2 }
 0xc99   : > { %p6888_p13 = pneg %p6887_p7  ;;  %p6893_p5 = scmp.lt.s32.totalorder %s6891_s25, %s6885_s12 }
 0xc9b   : > { %p6894_p10 = por %p6893_p5, %p6892_p12 }
 0xc9d   : > { %p6895_p0 = pnand %p6894_p10, %p6888_p13 }
 0xc9f   : > { %6898 = shalt.err (!%p6895_p0)
}
 0xca0   : > { %s6899_s5 = scalar_lea.hbm %s5655_s20, 128  ;;  %s6903_s19 = scalar_lea.hbm %s8511_s8, 256 }
 0xca1   : > { %p6900_p4 = scmp.ne.s32.totalorder %s5655_s20, %s6899_s5  ;;  %p6904_p8 = scmp.lt.s32.totalorder %s5655_s20, %s8511_s8 }
 0xca2   : > { %p6905_p6 = scmp.lt.s32.totalorder %s6903_s19, %s6899_s5 }
 0xca3   : > { %p6901_p9 = pnand %p6900_p4, %p8512_p1 }
 0xca4   : > { %p6906_p3 = por %p6905_p6, %p6904_p8 }
 0xca5   : > { %p6902_p11 = pneg %p6901_p9 }
 0xca7   : > { %p6907_p2 = pnand %p6906_p3, %p6902_p11 }
 0xca9   : > { %6910 = shalt.err (!%p6907_p2)
}
 0xcaa   : > { %6395 = dma.vmem_to_hbm [thread:$0]  (%p8512_p1), %s5658_s3, 128, %s5655_s20, %s5626_s26  }
 0xcab PF: > { %s8513_s11 = sld [smem:[#allocation36_spill]] }
 0xcac   : > { %s8514_s9 = sld [smem:[#allocation32_spill]] }
 0xcad   : > { %s8515_s7 = sld [smem:[#allocation42_spill]] }
 0xcb1   : > { %p6436_p7 = scmp.ge.s32.totalorder %s8513_s11, 2 }
 0xcb2   : > { %s5669_s28 = sand.u32 1, %s8514_s9  }
 0xcb3   : > { %p8516_p13 = scmp.ne.s32.totalorder %s8515_s7, 0  ;;  %s5670_s14 = scalar_lea.sflag [#allocation7], %s5669_s28 }
 0xcb5   : > { %p6425_p12 = pnand %p6436_p7, %p8516_p13 }
 0xcb7   : > { %p6426_p5 = pneg %p6425_p12 }
 0xcb9   : > { %6980 = dma.done.wait (%p6426_p5), %s5670_s14, 256  }
 0xcba   : > { %6982 = vsyncadd (%p6426_p5), %s5670_s14, 4294967040  ;;  %s8517_s23 = sld [smem:[#allocation30_spill]] }
 0xcbb   : > { %s8518_s24 = sld [smem:[#allocation43_spill]] }
 0xcc0   : > { %s5678_s2 = sand.u32 1, %s8517_s23  }
 0xcc1   : > { %p8519_p10 = scmp.ne.s32.totalorder %s8518_s24, 0  ;;  %s5679_s0 = scalar_lea.sflag [#allocation21], %s5678_s2 }
 0xcc3   : > { %p6428_p0 = pnand %p6436_p7, %p8519_p10 }
 0xcc5   : > { %p6429_p4 = pneg %p6428_p0 }
 0xcc7   : > { %6984 = dma.done.wait (%p6429_p4), %s5679_s0, 128  }
 0xcc8   : > { %6986 = vsyncadd (%p6429_p4), %s5679_s0, 4294967168  ;;  %s35_s19 = sadd.s32 1, %s8513_s11   ;;  %s8520_s3 = sld [smem:[#allocation31_spill]] }
 0xcc9   : > { %p32_p1 = scmp.ge.s32.totalorder %s35_s19, 6   ;;  %s8521_s11 = sld [smem:[#allocation40_spill]] }
 0xcca   : > { %s8522_s1 = sld [smem:[#allocation33_spill]]  ;;  %s8526_s30 = smov %s6993_s10 }
 0xccb   : > { %s8523_s14 = sld [smem:[#allocation41_spill]]  ;;  %s8528_s12 = smov %s7005_s13 }
 0xccc   : > { %s8524_s4 = sld [smem:[#allocation38_spill]]  ;;  %s8530_s15 = smov %s7021_s17 }
 0xccd   : > { %s8525_s20 = sld [smem:[#allocation39_spill]]  ;;  %s8531_s16 = smov %s7025_s18 }
 0xcce   : > { %s8527_s10 = smov %s8520_s3 }
 0xccf   :  { %34 = sbr.rel (!%p32_p1) target bundleno = 27 (0x1b), region = 169 }
 0xcd0   : > { %s8529_s13 = smov %s8522_s1 }
 0xcd2   : > { %s8532_s17 = smov %s8524_s4 }
 0xcd3   : > { %s8533_s18 = smov %s8525_s20 }
 0xcd4   :  { %5684 = vsyncpa [#allocation6], 1 }
 0xcd5   :  { %5686 = vsyncpa [#allocation6 + $0x1], 1 }
 0xcd6   :  { %5687 = vsyncpa [#allocation9], 1 }
 0xcd7   :  { %5689 = vsyncpa [#allocation9 + $0x1], 1 }
 0xcd8   :  { %5690 = vsyncpa [#allocation12], 1 }
 0xcd9   :  { %5691 = vsyncpa [#allocation15], 1 }
 0xcda   :  { %5692 = vsyncpa [#allocation18], 1 }
 0xcdb   :  { %5693 = vsyncpa [#allocation7], 1 }
 0xcdc   :  { %5695 = vsyncpa [#allocation7 + $0x1], 1 }
 0xcdd   :  { %5696 = vsyncpa [#allocation21], 1 }
 0xcde   :  { %5698 = vsyncpa [#allocation21 + $0x1], 1 }

</bundles_post_ra>
